<compile_context>
chip_gen: v6e
topology: v6e:2x2x1
jax: 0.10.0
libtpu: 0.0.40
codegen_flags: <defaults>
</compile_context>

<pallas_src>
import functools

import jax
import jax.numpy as jnp
from jax import lax
from jax.experimental import pallas as pl
from jax.experimental.pallas import tpu as pltpu


def _round_up(x, m):
    return ((x + m - 1) // m) * m


# ----------------------------- Pallas kernel --------------------------------
def _bifpn_add3_kernel(wn_ref, x0_ref, x1_ref, x2_ref, wm_ref, b_ref, o_ref):
    # wn_ref : SMEM (3,)      normalized fusion weights
    # x*_ref : VMEM (TM, C1)  tiles of the three inputs (NHWC-flattened pixels)
    # wm_ref : VMEM (C1, C2p) 1x1-conv weight, columns zero-padded to lane width
    # b_ref  : VMEM (1, C2p)  conv bias (zero-padded)
    # o_ref  : VMEM (TM, C2p)
    fused = (wn_ref[0] * x0_ref[...]
             + wn_ref[1] * x1_ref[...]
             + wn_ref[2] * x2_ref[...])
    # SiLU: x * sigmoid(x); reciprocal on the EUP slot (approx -> vrcp)
    y = fused * pl.reciprocal(1.0 + jnp.exp(-fused), approx=True)
    z = jnp.dot(y, wm_ref[...], preferred_element_type=jnp.float32) + b_ref[...]
    o_ref[...] = z.astype(o_ref.dtype)


def _fused_bifpn_add3(wn, x0, x1, x2, w_mat, bias, *, tile_m=512):
    """wn: (3,) f32; x*: (M, C1) f32; w_mat: (C1, C2p); bias: (1, C2p)."""
    M, C1 = x0.shape
    C2p = w_mat.shape[1]

    # Pick a row-tile: multiple of 8 (sublane), no larger than needed, and
    # double-buffered working set must fit a conservative VMEM budget
    # (safe for v7x's smaller 64 MiB physical / 32 MiB scoped VMEM).
    tile_m = max(8, min(tile_m, _round_up(M, 8)))
    tile_m = (tile_m // 8) * 8

    def vmem_bytes(tm):
        b = 4  # f32
        return (3 * 2 * tm * C1 * b        # three double-buffered input tiles
                + 2 * C1 * C2p * b         # weight
                + 2 * C2p * b              # bias
                + 2 * tm * C2p * b)        # double-buffered output tile

    budget = 24 * 1024 * 1024
    while tile_m > 8 and vmem_bytes(tile_m) > budget:
        tile_m //= 2
    tile_m = max(8, (tile_m // 8) * 8)

    M_pad = _round_up(M, tile_m)
    if M_pad != M:
        pad = ((0, M_pad - M), (0, 0))
        x0 = jnp.pad(x0, pad)
        x1 = jnp.pad(x1, pad)
        x2 = jnp.pad(x2, pad)

    out = pl.pallas_call(
        _bifpn_add3_kernel,
        out_shape=jax.ShapeDtypeStruct((M_pad, C2p), jnp.float32),
        grid_spec=pltpu.PrefetchScalarGridSpec(
            num_scalar_prefetch=0,
            grid=(M_pad // tile_m,),
            in_specs=[
                # fusion scalars: single SMEM copy, no per-step pipelining
                pl.BlockSpec(memory_space=pltpu.MemorySpace.SMEM),
                pl.BlockSpec((tile_m, C1), lambda i: (i, 0)),
                pl.BlockSpec((tile_m, C1), lambda i: (i, 0)),
                pl.BlockSpec((tile_m, C1), lambda i: (i, 0)),
                # constant index_map -> weight/bias stay resident across steps
                pl.BlockSpec((C1, C2p), lambda i: (0, 0)),
                pl.BlockSpec((1, C2p), lambda i: (0, 0)),
            ],
            out_specs=pl.BlockSpec((tile_m, C2p), lambda i: (i, 0)),
        ),
        compiler_params=pltpu.CompilerParams(
            dimension_semantics=("parallel",),
            vmem_limit_bytes=32 * 1024 * 1024,
        ),
    )(wn, x0, x1, x2, w_mat, bias)
    return out[:M]


# ------------------------------ module wrapper --------------------------------
class BiFPNAdd3Pallas:
    """Equivalent of models/common.py::BiFPN_Add3 (forward pass, inference)."""

    def __init__(self, c1, c2, key=None):
        key = jax.random.PRNGKey(0) if key is None else key
        kw, kb, kf = jax.random.split(key, 3)
        self.c1, self.c2 = c1, c2
        self.epsilon = 1e-4

        # Learnable fusion weights (torch init is ones; perturbed so the test
        # exercises the normalization/weighting path).
        self.w = jnp.ones((3,), jnp.float32) + 0.1 * jax.random.uniform(
            kf, (3,), jnp.float32)

        # 1x1 conv with bias (nn.Conv2d defaults); deterministic synthetic params.
        self.conv_weight = 0.1 * jax.random.normal(kw, (c2, c1, 1, 1), jnp.float32)
        self.conv_bias = 0.05 * jax.random.normal(kb, (c2,), jnp.float32)

        # Matmul operand (C1, C2) with output channels padded to a multiple of
        # 128 so kernel stores are lane-dense; padding is stripped afterwards.
        self.c2p = _round_up(c2, 128)
        w_mat = jnp.transpose(self.conv_weight[:, :, 0, 0], (1, 0))   # (C1, C2)
        self.w_mat = jnp.pad(w_mat, ((0, 0), (0, self.c2p - c2)))
        self.bias_p = jnp.pad(self.conv_bias, (0, self.c2p - c2)).reshape(1, self.c2p)

    @functools.partial(jax.jit, static_argnums=0)
    def __call__(self, x0, x1, x2):
        N, C1, H, W = x0.shape
        wn = self.w / (jnp.sum(self.w) + self.epsilon)        # (3,) normalized

        def to2d(x):  # NCHW -> NHWC -> (N*H*W, C1)   (glue / layout only)
            return jnp.transpose(x, (0, 2, 3, 1)).reshape(N * H * W, C1)

        out = _fused_bifpn_add3(wn, to2d(x0), to2d(x1), to2d(x2),
                                self.w_mat, self.bias_p)
        out = out[:, : self.c2].reshape(N, H, W, self.c2)
        return jnp.transpose(out, (0, 3, 1, 2))               # back to NCHW


# ------------------------------- reference ------------------------------------
def _reference(m, x0, x1, x2):
    wn = m.w / (jnp.sum(m.w) + m.epsilon)
    fused = wn[0] * x0 + wn[1] * x1 + wn[2] * x2
    y = fused * jax.nn.sigmoid(fused)
    out = lax.conv_general_dilated(
        y, m.conv_weight, window_strides=(1, 1), padding="VALID",
        dimension_numbers=("NCHW", "OIHW", "NCHW"))
    return out + m.conv_bias.reshape(1, m.c2, 1, 1)


if __name__ == "__main__":
    key = jax.random.PRNGKey(0)
    k0, k1, k2, kp = jax.random.split(key, 4)

    N, C1, H, W = 2, 4, 16, 16
    C2 = 8

    x0 = jax.random.normal(k0, (N, C1, H, W), jnp.float32)
    x1 = jax.random.normal(k1, (N, C1, H, W), jnp.float32)
    x2 = jax.random.normal(k2, (N, C1, H, W), jnp.float32)

    mod = BiFPNAdd3Pallas(C1, C2, key=kp)

    y = mod(x0, x1, x2)
    jax.block_until_ready(y)

    y_ref = _reference(mod, x0, x1, x2)
    assert y.shape == (N, C2, H, W), y.shape
    # tolerance accounts for the EUP approx-reciprocal in the in-kernel sigmoid
    assert jnp.allclose(y, y_ref, atol=2e-3, rtol=2e-3), float(jnp.abs(y - y_ref).max())

    print("KERNEL_OK")
</pallas_src>

<mosaic_0001>
module attributes {stable_mosaic.version = 11 : i64} {
  func.func @_bifpn_add3_kernel(%arg0: i32, %arg1: memref<3xf32, #tpu.memory_space<smem>>, %arg2: memref<512x4xf32, #tpu.memory_space<vmem>>, %arg3: memref<512x4xf32, #tpu.memory_space<vmem>>, %arg4: memref<512x4xf32, #tpu.memory_space<vmem>>, %arg5: memref<4x128xf32, #tpu.memory_space<vmem>>, %arg6: memref<1x128xf32, #tpu.memory_space<vmem>>, %arg7: memref<512x128xf32, #tpu.memory_space<vmem>>) attributes {dimension_semantics = [#tpu.dimension_semantics<parallel>], iteration_bounds = array<i64: 1>, scalar_prefetch = 0 : i64, scratch_operands = 0 : i64, tpu.core_type = #tpu.core_type<tc>, window_params = [{transform_indices = @transform_0, window_bounds = array<i64: 3>}, {transform_indices = @transform_1, window_bounds = array<i64: 512, 4>}, {transform_indices = @transform_2, window_bounds = array<i64: 512, 4>}, {transform_indices = @transform_3, window_bounds = array<i64: 512, 4>}, {pipeline_mode = #tpu.pipeline_mode<synchronous>, transform_indices = @transform_4, window_bounds = array<i64: 4, 128>}, {pipeline_mode = #tpu.pipeline_mode<synchronous>, transform_indices = @transform_5, window_bounds = array<i64: 1, 128>}, {transform_indices = @transform_6, window_bounds = array<i64: 512, 128>}]} {
    %c0 = arith.constant 0 : index
    %0 = memref.load %arg1[%c0] : memref<3xf32, #tpu.memory_space<smem>>
    %c0_0 = arith.constant 0 : index
    %c0_1 = arith.constant 0 : index
    %1 = vector.load %arg2[%c0_0, %c0_1] : memref<512x4xf32, #tpu.memory_space<vmem>>, vector<512x4xf32>
    %2 = vector.broadcast %0 : f32 to vector<512x4xf32>
    %3 = arith.mulf %2, %1 : vector<512x4xf32>
    %c1 = arith.constant 1 : index
    %4 = memref.load %arg1[%c1] : memref<3xf32, #tpu.memory_space<smem>>
    %c0_2 = arith.constant 0 : index
    %c0_3 = arith.constant 0 : index
    %5 = vector.load %arg3[%c0_2, %c0_3] : memref<512x4xf32, #tpu.memory_space<vmem>>, vector<512x4xf32>
    %6 = vector.broadcast %4 : f32 to vector<512x4xf32>
    %7 = arith.mulf %6, %5 : vector<512x4xf32>
    %8 = arith.addf %3, %7 : vector<512x4xf32>
    %c2 = arith.constant 2 : index
    %9 = memref.load %arg1[%c2] : memref<3xf32, #tpu.memory_space<smem>>
    %c0_4 = arith.constant 0 : index
    %c0_5 = arith.constant 0 : index
    %10 = vector.load %arg4[%c0_4, %c0_5] : memref<512x4xf32, #tpu.memory_space<vmem>>, vector<512x4xf32>
    %11 = vector.broadcast %9 : f32 to vector<512x4xf32>
    %12 = arith.mulf %11, %10 : vector<512x4xf32>
    %13 = arith.addf %8, %12 : vector<512x4xf32>
    %cst = arith.constant 0.000000e+00 : f32
    %14 = vector.broadcast %cst : f32 to vector<512x4xf32>
    %15 = arith.subf %14, %13 : vector<512x4xf32>
    %16 = math.exp %15 : vector<512x4xf32>
    %cst_6 = arith.constant 1.000000e+00 : f32
    %17 = vector.broadcast %cst_6 : f32 to vector<512x4xf32>
    %18 = arith.addf %17, %16 : vector<512x4xf32>
    %19 = tpu.reciprocal %18 {approx = true} : vector<512x4xf32> -> vector<512x4xf32>
    %20 = arith.mulf %13, %19 : vector<512x4xf32>
    %c0_7 = arith.constant 0 : index
    %c0_8 = arith.constant 0 : index
    %21 = vector.load %arg5[%c0_7, %c0_8] : memref<4x128xf32, #tpu.memory_space<vmem>>, vector<4x128xf32>
    %cst_9 = arith.constant dense<0.000000e+00> : vector<512x128xf32>
    %22 = tpu.matmul %20, %21, %cst_9 {dimension_numbers = #tpu.dot_dimension_numbers<[1], [0], [0], [1], [0, 0, 1, 1], [], []>} : vector<512x4xf32>, vector<4x128xf32>, vector<512x128xf32> -> vector<512x128xf32>
    %c0_10 = arith.constant 0 : index
    %c0_11 = arith.constant 0 : index
    %23 = vector.load %arg6[%c0_10, %c0_11] : memref<1x128xf32, #tpu.memory_space<vmem>>, vector<1x128xf32>
    %24 = vector.broadcast %23 : vector<1x128xf32> to vector<512x128xf32>
    %25 = arith.addf %22, %24 : vector<512x128xf32>
    %c0_12 = arith.constant 0 : index
    %c0_13 = arith.constant 0 : index
    %26 = vector.load %arg7[%c0_12, %c0_13] : memref<512x128xf32, #tpu.memory_space<vmem>>, vector<512x128xf32>
    tpu.vector_store %arg7[%c0_12, %c0_13], %25 {strides = array<i32>} : memref<512x128xf32, #tpu.memory_space<vmem>>, vector<512x128xf32>,
    return
  }
  func.func @transform_0(%arg0: i32) -> i32 {
    %c0_i32 = arith.constant 0 : i32
    %c0_i32_0 = arith.constant 0 : i32
    return %c0_i32 : i32
  }
  func.func @transform_1(%arg0: i32) -> (i32, i32) {
    %c0_i32 = arith.constant 0 : i32
    %c0_i32_0 = arith.constant 0 : i32
    return %arg0, %c0_i32 : i32, i32
  }
  func.func @transform_2(%arg0: i32) -> (i32, i32) {
    %c0_i32 = arith.constant 0 : i32
    %c0_i32_0 = arith.constant 0 : i32
    return %arg0, %c0_i32 : i32, i32
  }
  func.func @transform_3(%arg0: i32) -> (i32, i32) {
    %c0_i32 = arith.constant 0 : i32
    %c0_i32_0 = arith.constant 0 : i32
    return %arg0, %c0_i32 : i32, i32
  }
  func.func @transform_4(%arg0: i32) -> (i32, i32) {
    %c0_i32 = arith.constant 0 : i32
    %c0_i32_0 = arith.constant 0 : i32
    %c0_i32_1 = arith.constant 0 : i32
    return %c0_i32, %c0_i32_0 : i32, i32
  }
  func.func @transform_5(%arg0: i32) -> (i32, i32) {
    %c0_i32 = arith.constant 0 : i32
    %c0_i32_0 = arith.constant 0 : i32
    %c0_i32_1 = arith.constant 0 : i32
    return %c0_i32, %c0_i32_0 : i32, i32
  }
  func.func @transform_6(%arg0: i32) -> (i32, i32) {
    %c0_i32 = arith.constant 0 : i32
    %c0_i32_0 = arith.constant 0 : i32
    return %arg0, %c0_i32 : i32, i32
  }
}

</mosaic_0001>

<bundles_post_ra>
// kernel: a_call__.1
= control target key start
LH: loop header
LB: loop body
LE: loop exit
PB: predicated region body
PF: predicated region fallthrough
CT: control target
= control target key end

     0   :  { %11 = vsyncpa [#allocation3], 0  ;;  %s3498_s0 = inlined_call_operand.vmem [shape: f32[3], index: 0, kind: input, shape index: {}]   ;;  %s3499_s1 = inlined_call_operand.vmem [shape: f32[512,4], index: 1, kind: input, shape index: {}]   ;;  %s3500_s2 = inlined_call_operand.vmem [shape: f32[512,4], index: 2, kind: input, shape index: {}]   ;;  %s3501_s3 = inlined_call_operand.vmem [shape: f32[512,4], index: 3, kind: input, shape index: {}]   ;;  %s3502_s4 = inlined_call_operand.vmem [shape: f32[4,128], index: 4, kind: input, shape index: {}]   ;;  %s3503_s5 = inlined_call_operand.vmem [shape: f32[1,128], index: 5, kind: input, shape index: {}]   ;;  %s3504_s6 = inlined_call_operand.vmem [shape: f32[512,128], index: 6, kind: output, shape index: {}]  }
   0x1   :  { %s18_s23 = sshll.u32 %s3498_s0, 4  ;;  %s19_s23 = int_to_ptr.vmem [resolvable:$true] %s18_s23 }
   0x2   :  { %s2087_s24 = scalar_lea.vmem %s19_s23, 16  ;;  %p2092_p1 = scmp.lt.s32.totalorder %s19_s23, %s19_s23 }
   0x3   :  { %p2088_p0 = scmp.ne.s32.totalorder %s19_s23, %s2087_s24  ;;  %p2093_p2 = scmp.lt.s32.totalorder %s2087_s24, %s2087_s24 }
   0x5   :  { %p2094_p3 = por %p2093_p2, %p2092_p1 }
   0x7   :  { %p2095_p4 = pnand %p2094_p3, %p2088_p0 }
   0x9   :  { %2098 = shalt.err (!%p2095_p4)
}
   0xa   :  { %s2101_s25 = smov [#allocation2]  }
   0xb   :  { %21 = dma.vmem_to_smem %s19_s23, 16, %s2101_s25, [#allocation3]  }
   0xc   :  { %2099 = dma.done.wait [#allocation3], 16  }
   0xd   :  { %2100 = vsyncadd [#allocation3], 4294967280 }
   0xe   :  { %35 = sfence }
   0xf   :  { %v938_v0 = vld [vmem:[%s3502_s4] sm:$0xf]  ;;  %vm1139_vm0 = vcmask 1043456   ;;  %s36_s28 = sld [smem:[#allocation2]]  ;;  %v38_v4 = vld [vmem:[%s3499_s1 + $0x8] sm:$0xff]  ;;  %v39_v22 = vld [vmem:[%s3499_s1 + $0x10] sm:$0xff] }
  0x10   :  { %1730 = vmatprep.subr.msk.mxu0 %vm1139_vm0, %v938_v0  ;;  %1828 = vmatprep.subr.msk.mxu1 %vm1139_vm0, %v938_v0  ;;  %s1597_s0 = sld [smem:[#allocation2 + $0x1]]  ;;  %v37_v1 = vld [vmem:[%s3499_s1] sm:$0xff]  ;;  %v168_v7 = vld [vmem:[%s3500_s2 + $0x8] sm:$0xff]  ;;  %v169_v23 = vld [vmem:[%s3500_s2 + $0x10] sm:$0xff]  ;;  %vm946_vm1 = vcmask 31744  }
  0x11   :  { %1731 = vmatpush3.msk.msra.mxu0 %vm1139_vm0, %v938_v0  ;;  %1829 = vmatpush3.msk.msra.mxu1 %vm1139_vm0, %v938_v0  ;;  %s1598_s29 = sld [smem:[#allocation2 + $0x2]]  ;;  %v167_v2 = vld [vmem:[%s3500_s2] sm:$0xff]  ;;  %v362_v10 = vld [vmem:[%s3501_s3 + $0x8] sm:$0xff]  ;;  %v363_v24 = vld [vmem:[%s3501_s3 + $0x10] sm:$0xff] }
  0x12   :  { %v69_v3 = vld [vmem:[%s3499_s1 + $0x100] sm:$0xff]  ;;  %v70_v11 = vld [vmem:[%s3499_s1 + $0x108] sm:$0xff]  ;;  %v71_v33 = vld [vmem:[%s3499_s1 + $0x110] sm:$0xff] }
  0x13   :  { %v361_v5 = vld [vmem:[%s3501_s3] sm:$0xff]  ;;  %v200_v16 = vld [vmem:[%s3500_s2 + $0x108] sm:$0xff]  ;;  %v201_v34 = vld [vmem:[%s3500_s2 + $0x110] sm:$0xff] }
  0x14   :  { %v199_v6 = vld [vmem:[%s3500_s2 + $0x100] sm:$0xff]  ;;  %v394_v17 = vld [vmem:[%s3501_s3 + $0x108] sm:$0xff]  ;;  %v395_v35 = vld [vmem:[%s3501_s3 + $0x110] sm:$0xff] }
  0x15   :  { %v2164_v8 = vstv %s36_s28  ;;  %v393_v9 = vld [vmem:[%s3501_s3 + $0x100] sm:$0xff]  ;;  %v40_v44 = vld [vmem:[%s3499_s1 + $0x18] sm:$0xff] }
  0x16   :  { %v102_v12 = vmul.f32 %v2164_v8, %v37_v1  ;;  %v2176_v13 = vstv %s1597_s0  ;;  %v134_v14 = vmul.f32 %v2164_v8, %v69_v3  ;;  %v103_v15 = vmul.f32 %v2164_v8, %v38_v4  ;;  %v170_v45 = vld [vmem:[%s3500_s2 + $0x18] sm:$0xff] }
  0x17   :  { %v232_v18 = vmul.f32 %v2176_v13, %v167_v2  ;;  %v2187_v19 = vstv %s1598_s29  ;;  %v264_v20 = vmul.f32 %v2176_v13, %v199_v6  ;;  %v233_v21 = vmul.f32 %v2176_v13, %v168_v7  ;;  %v364_v50 = vld [vmem:[%s3501_s3 + $0x18] sm:$0xff]  ;;  %v41_v6 = vld [vmem:[%s3499_s1 + $0x20] sm:$0xff] }
  0x18   :  { %v426_v25 = vmul.f32 %v2187_v19, %v361_v5  ;;  %v458_v26 = vmul.f32 %v2187_v19, %v393_v9  ;;  %v427_v27 = vmul.f32 %v2187_v19, %v362_v10  ;;  %v135_v28 = vmul.f32 %v2164_v8, %v70_v11  ;;  %v72_v59 = vld [vmem:[%s3499_s1 + $0x118] sm:$0xff]  ;;  %v171_v11 = vld [vmem:[%s3500_s2 + $0x20] sm:$0xff] }
  0x19   :  { %v296_v29 = vadd.f32 %v232_v18, %v102_v12  ;;  %v328_v30 = vadd.f32 %v264_v20, %v134_v14  ;;  %v297_v31 = vadd.f32 %v233_v21, %v103_v15  ;;  %v265_v32 = vmul.f32 %v2176_v13, %v200_v16  ;;  %v202_v60 = vld [vmem:[%s3500_s2 + $0x118] sm:$0xff]  ;;  %v365_v12 = vld [vmem:[%s3501_s3 + $0x20] sm:$0xff] }
  0x1a   :  { %v459_v36 = vmul.f32 %v2187_v19, %v394_v17  ;;  %v104_v37 = vmul.f32 %v2164_v8, %v39_v22  ;;  %v234_v38 = vmul.f32 %v2176_v13, %v169_v23  ;;  %v428_v39 = vmul.f32 %v2187_v19, %v363_v24  ;;  %v396_v61 = vld [vmem:[%s3501_s3 + $0x118] sm:$0xff]  ;;  %v73_v17 = vld [vmem:[%s3499_s1 + $0x120] sm:$0xff] }
  0x1b   :  { %v2218_v40 = vadd.f32 %v426_v25, %v296_v29  ;;  %v2220_v41 = vadd.f32 %v458_v26, %v328_v30  ;;  %v2222_v42 = vadd.f32 %v427_v27, %v297_v31  ;;  %v329_v43 = vadd.f32 %v265_v32, %v135_v28  ;;  %v203_v22 = vld [vmem:[%s3500_s2 + $0x120] sm:$0xff]  ;;  %v42_v27 = vld [vmem:[%s3499_s1 + $0x28] sm:$0xff] }
  0x1c   :  { %v298_v46 = vadd.f32 %v234_v38, %v104_v37  ;;  %v136_v47 = vmul.f32 %v2164_v8, %v71_v33  ;;  %v266_v48 = vmul.f32 %v2176_v13, %v201_v34  ;;  %v460_v49 = vmul.f32 %v2187_v19, %v395_v35  ;;  %v397_v23 = vld [vmem:[%s3501_s3 + $0x120] sm:$0xff]  ;;  %v172_v28 = vld [vmem:[%s3500_s2 + $0x28] sm:$0xff] }
  0x1d   :  { %v554_v51 = vsub.f32 0.0, %v2218_v40  ;;  %v586_v52 = vsub.f32 0.0, %v2220_v41  ;;  %v555_v53 = vsub.f32 0.0, %v2222_v42  ;;  %v2239_v54 = vadd.f32 %v459_v36, %v329_v43  ;;  %v366_v32 = vld [vmem:[%s3501_s3 + $0x28] sm:$0xff] }
  0x1e   :  { %v2241_v55 = vadd.f32 %v428_v39, %v298_v46  ;;  %v330_v56 = vadd.f32 %v266_v48, %v136_v47  ;;  %v105_v57 = vmul.f32 %v2164_v8, %v40_v44  ;;  %v235_v58 = vmul.f32 %v2176_v13, %v170_v45  ;;  %v74_v33 = vld [vmem:[%s3499_s1 + $0x128] sm:$0xff]  ;;  %v43_v46 = vld [vmem:[%s3499_s1 + $0x30] sm:$0xff] }
  0x1f   :  { %v618_v62 = vmul.f32 1.442695, %v554_v51  ;;  %v682_v63 = vmul.f32 1.442695, %v586_v52  ;;  %v620_v0 = vmul.f32 1.442695, %v555_v53  ;;  %v429_v1 = vmul.f32 %v2187_v19, %v364_v50 }
  0x20   :  { %v587_v2 = vsub.f32 0.0, %v2239_v54  ;;  %v556_v3 = vsub.f32 0.0, %v2241_v55  ;;  %v2257_v4 = vadd.f32 %v460_v49, %v330_v56  ;;  %v299_v5 = vadd.f32 %v235_v58, %v105_v57  ;;  %v204_v37 = vld [vmem:[%s3500_s2 + $0x128] sm:$0xff]  ;;  %v173_v51 = vld [vmem:[%s3500_s2 + $0x30] sm:$0xff] }
  0x21   :  { %1831 = vpow2.f32 %v618_v62  ;;  %v137_v7 = vmul.f32 %v2164_v8, %v72_v59  ;;  %v267_v9 = vmul.f32 %v2176_v13, %v202_v60  ;;  %v461_v10 = vmul.f32 %v2187_v19, %v396_v61  ;;  %v398_v45 = vld [vmem:[%s3501_s3 + $0x128] sm:$0xff]  ;;  %v367_v57 = vld [vmem:[%s3501_s3 + $0x30] sm:$0xff] }
  0x22   :  { %1833 = vpow2.f32 %v682_v63  ;;  %v684_v14 = vmul.f32 1.442695, %v587_v2  ;;  %v622_v15 = vmul.f32 1.442695, %v556_v3  ;;  %v588_v16 = vsub.f32 0.0, %v2257_v4  ;;  %v75_v58 = vld [vmem:[%s3499_s1 + $0x130] sm:$0xff] }
  0x23   :  { %1835 = vpow2.f32 %v620_v0  ;;  %v2275_v18 = vadd.f32 %v429_v1, %v299_v5  ;;  %v331_v20 = vadd.f32 %v267_v9, %v137_v7  ;;  %v106_v21 = vmul.f32 %v2164_v8, %v41_v6  ;;  %v205_v63 = vld [vmem:[%s3500_s2 + $0x130] sm:$0xff]  ;;  %v44_v5 = vld [vmem:[%s3499_s1 + $0x38] sm:$0xff] }
  0x24   :  { %1837 = vpow2.f32 %v684_v14  ;;  %v686_v24 = vmul.f32 1.442695, %v588_v16  ;;  %v236_v25 = vmul.f32 %v2176_v13, %v171_v11  ;;  %v430_v26 = vmul.f32 %v2187_v19, %v365_v12  ;;  %v399_v3 = vld [vmem:[%s3501_s3 + $0x130] sm:$0xff]  ;;  %v174_v16 = vld [vmem:[%s3500_s2 + $0x38] sm:$0xff] }
  0x25   :  { %1839 = vpow2.f32 %v622_v15  ;;  %v557_v29 = vsub.f32 0.0, %v2275_v18  ;;  %v2293_v30 = vadd.f32 %v461_v10, %v331_v20  ;;  %v138_v31 = vmul.f32 %v2164_v8, %v73_v17 }
  0x26   :  { %1841 = vpow2.f32 %v686_v24  ;;  %v300_v34 = vadd.f32 %v236_v25, %v106_v21  ;;  %v268_v35 = vmul.f32 %v2176_v13, %v203_v22  ;;  %v462_v36 = vmul.f32 %v2187_v19, %v397_v23 }
  0x27   :  { %v624_v38 = vmul.f32 1.442695, %v557_v29  ;;  %v589_v39 = vsub.f32 0.0, %v2293_v30  ;;  %v107_v43 = vmul.f32 %v2164_v8, %v42_v27  ;;  %v237_v44 = vmul.f32 %v2176_v13, %v172_v28 }
  0x28   :  { %v2316_v47 = vadd.f32 %v430_v26, %v300_v34  ;;  %v332_v48 = vadd.f32 %v268_v35, %v138_v31  ;;  %v431_v49 = vmul.f32 %v2187_v19, %v366_v32  ;;  %v139_v50 = vmul.f32 %v2164_v8, %v74_v33  ;;  %v368_v33 = vld [vmem:[%s3501_s3 + $0x38] sm:$0xff] }
  0x29   :  { %1843 = vpow2.f32 %v624_v38  ;;  %v688_v52 = vmul.f32 1.442695, %v589_v39  ;;  %v301_v53 = vadd.f32 %v237_v44, %v107_v43  ;;  %v269_v56 = vmul.f32 %v2176_v13, %v204_v37  ;;  %v76_v38 = vld [vmem:[%s3499_s1 + $0x138] sm:$0xff] }
  0x2a   :  { %v558_v59 = vsub.f32 0.0, %v2316_v47  ;;  %v2331_v60 = vadd.f32 %v462_v36, %v332_v48  ;;  %v463_v61 = vmul.f32 %v2187_v19, %v398_v45  ;;  %v108_v62 = vmul.f32 %v2164_v8, %v43_v46  ;;  %v206_v46 = vld [vmem:[%s3500_s2 + $0x138] sm:$0xff] }
  0x2b   :  { %1845 = vpow2.f32 %v688_v52  ;;  %v2338_v0 = vadd.f32 %v431_v49, %v301_v53  ;;  %v333_v1 = vadd.f32 %v269_v56, %v139_v50  ;;  %v238_v2 = vmul.f32 %v2176_v13, %v173_v51  ;;  %v400_v48 = vld [vmem:[%s3501_s3 + $0x138] sm:$0xff]  ;;  %v45_v53 = vld [vmem:[%s3499_s1 + $0x40] sm:$0xff] }
  0x2c   :  { %v626_v6 = vmul.f32 1.442695, %v558_v59  ;;  %v590_v7 = vsub.f32 0.0, %v2331_v60  ;;  %v432_v9 = vmul.f32 %v2187_v19, %v367_v57  ;;  %v140_v10 = vmul.f32 %v2164_v8, %v75_v58  ;;  %v175_v56 = vld [vmem:[%s3500_s2 + $0x40] sm:$0xff] }
  0x2d   :  { %v559_v11 = vsub.f32 0.0, %v2338_v0  ;;  %v2351_v12 = vadd.f32 %v463_v61, %v333_v1  ;;  %v302_v14 = vadd.f32 %v238_v2, %v108_v62  ;;  %v270_v15 = vmul.f32 %v2176_v13, %v205_v63  ;;  %v369_v1 = vld [vmem:[%s3501_s3 + $0x40] sm:$0xff] }
  0x2e   :  { %v1832_v17 = vpop.eup %1831  ;;  %1847 = vpow2.f32 %v626_v6  ;;  %v690_v20 = vmul.f32 1.442695, %v590_v7  ;;  %v464_v21 = vmul.f32 %v2187_v19, %v399_v3  ;;  %v109_v22 = vmul.f32 %v2164_v8, %v44_v5  ;;  %v77_v2 = vld [vmem:[%s3499_s1 + $0x140] sm:$0xff] }
  0x2f   :  { %v1834_v23 = vpop.eup %1833  ;;  %v746_v24 = vadd.f32 1.0, %v1832_v17  ;;  %v628_v25 = vmul.f32 1.442695, %v559_v11  ;;  %v591_v26 = vsub.f32 0.0, %v2351_v12  ;;  %v2360_v27 = vadd.f32 %v432_v9, %v302_v14  ;;  %v207_v14 = vld [vmem:[%s3500_s2 + $0x140] sm:$0xff] }
  0x30   :  { %v1836_v28 = vpop.eup %1835  ;;  %v778_v29 = vadd.f32 1.0, %v1834_v23  ;;  %1849 = vpow2.f32 %v690_v20  ;;  %v334_v31 = vadd.f32 %v270_v15, %v140_v10  ;;  %v239_v32 = vmul.f32 %v2176_v13, %v174_v16  ;;  %v401_v15 = vld [vmem:[%s3501_s3 + $0x140] sm:$0xff]  ;;  %v176_v23 = vld [vmem:[%s3500_s2 + $0x48] sm:$0xff] }
  0x31   :  { %v1838_v34 = vpop.eup %1837  ;;  %1851 = vrcp.f32 %v746_v24  ;;  %v747_v35 = vadd.f32 1.0, %v1836_v28  ;;  %v692_v36 = vmul.f32 1.442695, %v591_v26  ;;  %v560_v37 = vsub.f32 0.0, %v2360_v27 }
  0x32   :  { %v1840_v39 = vpop.eup %1839  ;;  %1853 = vrcp.f32 %v778_v29  ;;  %v779_v43 = vadd.f32 1.0, %v1838_v34  ;;  %v2370_v44 = vadd.f32 %v464_v21, %v334_v31  ;;  %v303_v45 = vadd.f32 %v239_v32, %v109_v22  ;;  %v46_v22 = vld [vmem:[%s3499_s1 + $0x48] sm:$0xff] }
  0x33   :  { %v1842_v49 = vpop.eup %1841  ;;  %1855 = vrcp.f32 %v747_v35  ;;  %v748_v50 = vadd.f32 1.0, %v1840_v39  ;;  %v630_v51 = vmul.f32 1.442695, %v560_v37  ;;  %v433_v52 = vmul.f32 %v2187_v19, %v368_v33  ;;  %v370_v32 = vld [vmem:[%s3501_s3 + $0x48] sm:$0xff] }
  0x34   :  { %1857 = vrcp.f32 %v779_v43  ;;  %v780_v57 = vadd.f32 1.0, %v1842_v49  ;;  %v592_v58 = vsub.f32 0.0, %v2370_v44  ;;  %v141_v59 = vmul.f32 %v2164_v8, %v76_v38  ;;  %v78_v43 = vld [vmem:[%s3499_s1 + $0x148] sm:$0xff] }
  0x35   :  { %1859 = vrcp.f32 %v748_v50  ;;  %v2387_v61 = vadd.f32 %v433_v52, %v303_v45  ;;  %v271_v62 = vmul.f32 %v2176_v13, %v206_v46  ;;  %v465_v63 = vmul.f32 %v2187_v19, %v400_v48  ;;  %v208_v50 = vld [vmem:[%s3500_s2 + $0x148] sm:$0xff] }
  0x36   :  { %v1844_v3 = vpop.eup %1843  ;;  %1861 = vrcp.f32 %v780_v57  ;;  %v694_v5 = vmul.f32 1.442695, %v592_v58  ;;  %v110_v6 = vmul.f32 %v2164_v8, %v45_v53  ;;  %v240_v7 = vmul.f32 %v2176_v13, %v175_v56  ;;  %v402_v57 = vld [vmem:[%s3501_s3 + $0x148] sm:$0xff] }
  0x37   :  { %v749_v9 = vadd.f32 1.0, %v1844_v3  ;;  %1863 = vpow2.f32 %v628_v25  ;;  %v561_v10 = vsub.f32 0.0, %v2387_v61  ;;  %v335_v11 = vadd.f32 %v271_v62, %v141_v59 }
  0x38   :  { %v1846_v16 = vpop.eup %1845  ;;  %1865 = vpow2.f32 %v692_v36  ;;  %v304_v17 = vadd.f32 %v240_v7, %v110_v6  ;;  %v434_v20 = vmul.f32 %v2187_v19, %v369_v1  ;;  %v142_v21 = vmul.f32 %v2164_v8, %v77_v2  ;;  %v47_v1 = vld [vmem:[%s3499_s1 + $0x50] sm:$0xff] }
  0x39   :  { %1867 = vrcp.f32 %v749_v9  ;;  %v781_v24 = vadd.f32 1.0, %v1846_v16  ;;  %v632_v25 = vmul.f32 1.442695, %v561_v10  ;;  %v2414_v26 = vadd.f32 %v465_v63, %v335_v11  ;;  %v371_v7 = vld [vmem:[%s3501_s3 + $0x50] sm:$0xff] }
  0x3a   :  { %1869 = vpow2.f32 %v630_v51  ;;  %v2416_v28 = vadd.f32 %v434_v20, %v304_v17  ;;  %v272_v29 = vmul.f32 %v2176_v13, %v207_v14  ;;  %v466_v31 = vmul.f32 %v2187_v19, %v401_v15  ;;  %v79_v14 = vld [vmem:[%s3499_s1 + $0x150] sm:$0xff] }
  0x3b   :  { %v1848_v33 = vpop.eup %1847  ;;  %1871 = vrcp.f32 %v781_v24  ;;  %v593_v34 = vsub.f32 0.0, %v2414_v26  ;;  %v111_v35 = vmul.f32 %v2164_v8, %v46_v22  ;;  %v241_v36 = vmul.f32 %v2176_v13, %v176_v23 }
  0x3c   :  { %v750_v37 = vadd.f32 1.0, %v1848_v33  ;;  %1873 = vpow2.f32 %v694_v5  ;;  %v562_v38 = vsub.f32 0.0, %v2416_v28  ;;  %v336_v39 = vadd.f32 %v272_v29, %v142_v21 }
  0x3d   :  { %v1850_v45 = vpop.eup %1849  ;;  %1875 = vpow2.f32 %v632_v25  ;;  %v696_v46 = vmul.f32 1.442695, %v593_v34  ;;  %v305_v48 = vadd.f32 %v241_v36, %v111_v35  ;;  %v435_v49 = vmul.f32 %v2187_v19, %v370_v32 }
  0x3e   :  { %v1852_v51 = vpop.eup %1851  ;;  %1877 = vrcp.f32 %v750_v37  ;;  %v782_v52 = vadd.f32 1.0, %v1850_v45  ;;  %v634_v53 = vmul.f32 1.442695, %v562_v38  ;;  %v2434_v56 = vadd.f32 %v466_v31, %v336_v39  ;;  %v48_v31 = vld [vmem:[%s3499_s1 + $0x58] sm:$0xff] }
  0x3f   :  { %v1854_v58 = vpop.eup %1853  ;;  %v874_v59 = vmul.f32 %v1852_v51, %v2218_v40  ;;  %1879 = vpow2.f32 %v696_v46  ;;  %v2440_v62 = vadd.f32 %v435_v49, %v305_v48  ;;  %v143_v63 = vmul.f32 %v2164_v8, %v78_v43  ;;  %v177_v40 = vld [vmem:[%s3500_s2 + $0x50] sm:$0xff]  ;;  %v178_v39 = vld [vmem:[%s3500_s2 + $0x58] sm:$0xff] }
  0x40   :  { %v1856_v2 = vpop.eup %1855  ;;  %v906_v3 = vmul.f32 %v1854_v58, %v2220_v41  ;;  %1881 = vrcp.f32 %v782_v52  ;;  %v594_v5 = vsub.f32 0.0, %v2434_v56  ;;  %v273_v6 = vmul.f32 %v2176_v13, %v208_v50  ;;  %v372_v49 = vld [vmem:[%s3501_s3 + $0x58] sm:$0xff] }
  0x41   :  { %v1858_v9 = vpop.eup %1857  ;;  %1732 = vmatprep.mubr.msk.f32.mxu0 %vm946_vm1, %v874_v59  ;;  %v875_v10 = vmul.f32 %v1856_v2, %v2222_v42  ;;  %1883 = vpow2.f32 %v634_v53  ;;  %v563_v41 = vsub.f32 0.0, %v2440_v62  ;;  %v467_v11 = vmul.f32 %v2187_v19, %v402_v57  ;;  %v209_v42 = vld [vmem:[%s3500_s2 + $0x150] sm:$0xff]  ;;  %v80_v57 = vld [vmem:[%s3499_s1 + $0x158] sm:$0xff] }
  0x42   :  { %v1860_v15 = vpop.eup %1859  ;;  %1780 = vmatprep.mubr.msk.f32.mxu1 %vm946_vm1, %v906_v3  ;;  %v907_v16 = vmul.f32 %v1858_v9, %v2239_v54  ;;  %v698_v17 = vmul.f32 1.442695, %v594_v5  ;;  %v337_v20 = vadd.f32 %v273_v6, %v143_v63  ;;  %v112_v21 = vmul.f32 %v2164_v8, %v47_v1  ;;  %v403_v54 = vld [vmem:[%s3501_s3 + $0x150] sm:$0xff] }
  0x43   :  { %v1862_v22 = vpop.eup %1861  ;;  %1733 = vmatmul.mubr.msk.f32.vlgmr.msra.gmra.mxu0 %vm946_vm1, %v875_v10  ;;  %v876_v23 = vmul.f32 %v1860_v15, %v2241_v55  ;;  %v636_v24 = vmul.f32 1.442695, %v563_v41  ;;  %v242_v25 = vmul.f32 %v2176_v13, %v177_v40  ;;  %v436_v29 = vmul.f32 %v2187_v19, %v371_v7  ;;  %v210_v40 = vld [vmem:[%s3500_s2 + $0x158] sm:$0xff] }
  0x44   :  { %v1864_v32 = vpop.eup %1863  ;;  %1781 = vmatmul.mubr.msk.f32.vlgmr.msra.gmra.mxu1 %vm946_vm1, %v907_v16  ;;  %v908_v33 = vmul.f32 %v1862_v22, %v2257_v4  ;;  %1885 = vpow2.f32 %v698_v17  ;;  %v2480_v55 = vadd.f32 %v467_v11, %v337_v20  ;;  %v144_v34 = vmul.f32 %v2164_v8, %v79_v14  ;;  %v49_v22 = vld [vmem:[%s3499_s1 + $0x60] sm:$0xff] }
  0x45   :  { %v1866_v35 = vpop.eup %1865  ;;  %1735 = vmatprep.mubr.msk.f32.mxu0 %vm946_vm1, %v876_v23  ;;  %v751_v36 = vadd.f32 1.0, %v1864_v32  ;;  %1887 = vpow2.f32 %v636_v24  ;;  %v306_v37 = vadd.f32 %v242_v25, %v112_v21  ;;  %v274_v38 = vmul.f32 %v2176_v13, %v209_v42  ;;  %v179_v23 = vld [vmem:[%s3500_s2 + $0x60] sm:$0xff] }
  0x46   :  { %v1868_v43 = vpop.eup %1867  ;;  %1783 = vmatprep.mubr.msk.f32.mxu1 %vm946_vm1, %v908_v33  ;;  %v783_v4 = vadd.f32 1.0, %v1866_v35  ;;  %v595_v45 = vsub.f32 0.0, %v2480_v55  ;;  %v468_v46 = vmul.f32 %v2187_v19, %v403_v54  ;;  %v113_v48 = vmul.f32 %v2164_v8, %v48_v31  ;;  %v81_v35 = vld [vmem:[%s3499_s1 + $0x160] sm:$0xff] }
  0x47   :  { %v1870_v50 = vpop.eup %1869  ;;  %v877_v51 = vmul.f32 %v1868_v43, %v2275_v18  ;;  %1889 = vrcp.f32 %v751_v36  ;;  %v2496_v52 = vadd.f32 %v436_v29, %v306_v37  ;;  %v338_v53 = vadd.f32 %v274_v38, %v144_v34  ;;  %v211_v36 = vld [vmem:[%s3500_s2 + $0x160] sm:$0xff] }
  0x48   :  { %v1872_v58 = vpop.eup %1871  ;;  %1891 = vrcp.f32 %v783_v4  ;;  %v752_v59 = vadd.f32 1.0, %v1870_v50  ;;  %v700_v63 = vmul.f32 1.442695, %v595_v45  ;;  %v243_v1 = vmul.f32 %v2176_v13, %v178_v39 }
  0x49   :  { %v1874_v2 = vpop.eup %1873  ;;  %1736 = vmatmul.mubr.msk.f32.gmra.mxu0 %vm946_vm1, %v877_v51  ;;  %v909_v3 = vmul.f32 %v1872_v58, %v2293_v30  ;;  %v564_v18 = vsub.f32 0.0, %v2496_v52  ;;  %v2505_v5 = vadd.f32 %v468_v46, %v338_v53  ;;  %v437_v6 = vmul.f32 %v2187_v19, %v372_v49  ;;  %v404_v30 = vld [vmem:[%s3501_s3 + $0x158] sm:$0xff]  ;;  %v50_v46 = vld [vmem:[%s3499_s1 + $0x68] sm:$0xff] }
  0x4a   :  { %v1876_v7 = vpop.eup %1875  ;;  %1893 = vrcp.f32 %v752_v59  ;;  %v784_v9 = vadd.f32 1.0, %v1874_v2  ;;  %v307_v10 = vadd.f32 %v243_v1, %v113_v48  ;;  %v145_v41 = vmul.f32 %v2164_v8, %v80_v57  ;;  %v180_v53 = vld [vmem:[%s3500_s2 + $0x68] sm:$0xff] }
  0x4b   :  { %v1878_v11 = vpop.eup %1877  ;;  %1784 = vmatmul.mubr.msk.f32.gmra.mxu1 %vm946_vm1, %v909_v3  ;;  %v753_v14 = vadd.f32 1.0, %v1876_v7  ;;  %1895 = vpow2.f32 %v700_v63  ;;  %v638_v15 = vmul.f32 1.442695, %v564_v18  ;;  %v596_v16 = vsub.f32 0.0, %v2505_v5  ;;  %v374_v57 = vld [vmem:[%s3501_s3 + $0x68] sm:$0xff] }
  0x4c   :  { %v1880_v17 = vpop.eup %1879  ;;  %v878_v20 = vmul.f32 %v1878_v11, %v2316_v47  ;;  %1897 = vrcp.f32 %v784_v9  ;;  %v2518_v21 = vadd.f32 %v437_v6, %v307_v10  ;;  %v275_v42 = vmul.f32 %v2176_v13, %v210_v40  ;;  %v373_v47 = vld [vmem:[%s3501_s3 + $0x60] sm:$0xff]  ;;  %v82_v40 = vld [vmem:[%s3499_s1 + $0x168] sm:$0xff] }
  0x4d   :  { %v1882_v24 = vpop.eup %1881  ;;  %1899 = vrcp.f32 %v753_v14  ;;  %v785_v25 = vadd.f32 1.0, %v1880_v17  ;;  %v702_v29 = vmul.f32 1.442695, %v596_v16  ;;  %v469_v54 = vmul.f32 %v2187_v19, %v404_v30  ;;  %v212_v30 = vld [vmem:[%s3500_s2 + $0x168] sm:$0xff] }
  0x4e   :  { %v1884_v31 = vpop.eup %1883  ;;  %1738 = vmatprep.mubr.msk.f32.mxu0 %vm946_vm1, %v878_v20  ;;  %v910_v32 = vmul.f32 %v1882_v24, %v2331_v60  ;;  %1901 = vpow2.f32 %v638_v15  ;;  %v565_v33 = vsub.f32 0.0, %v2518_v21  ;;  %v339_v34 = vadd.f32 %v275_v42, %v145_v41  ;;  %v405_v60 = vld [vmem:[%s3501_s3 + $0x160] sm:$0xff]  ;;  %v406_v11 = vld [vmem:[%s3501_s3 + $0x168] sm:$0xff]  ;;  %v51_v20 = vld [vmem:[%s3499_s1 + $0x70] sm:$0xff] }
  0x4f   :  { %1903 = vrcp.f32 %v785_v25  ;;  %v754_v37 = vadd.f32 1.0, %v1884_v31  ;;  %v114_v38 = vmul.f32 %v2164_v8, %v49_v22  ;;  %v244_v39 = vmul.f32 %v2176_v13, %v179_v23  ;;  %v181_v42 = vld [vmem:[%s3500_s2 + $0x70] sm:$0xff] }
  0x50   :  { %1786 = vmatprep.mubr.msk.f32.mxu1 %vm946_vm1, %v910_v32  ;;  %1905 = vpow2.f32 %v702_v29  ;;  %v640_v43 = vmul.f32 1.442695, %v565_v33  ;;  %v2546_v4 = vadd.f32 %v469_v54, %v339_v34  ;;  %v438_v45 = vmul.f32 %v2187_v19, %v373_v47  ;;  %v375_v31 = vld [vmem:[%s3501_s3 + $0x70] sm:$0xff] }
  0x51   :  { %v1886_v48 = vpop.eup %1885  ;;  %1907 = vrcp.f32 %v754_v37  ;;  %v308_v49 = vadd.f32 %v244_v39, %v114_v38  ;;  %v146_v50 = vmul.f32 %v2164_v8, %v81_v35  ;;  %v276_v51 = vmul.f32 %v2176_v13, %v211_v36  ;;  %v83_v36 = vld [vmem:[%s3499_s1 + $0x170] sm:$0xff] }
  0x52   :  { %v1888_v58 = vpop.eup %1887  ;;  %v786_v59 = vadd.f32 1.0, %v1886_v48  ;;  %1909 = vpow2.f32 %v640_v43  ;;  %v597_v63 = vsub.f32 0.0, %v2546_v4  ;;  %v470_v1 = vmul.f32 %v2187_v19, %v405_v60 }
  0x53   :  { %v755_v2 = vadd.f32 1.0, %v1888_v58  ;;  %v2562_v3 = vadd.f32 %v438_v45, %v308_v49  ;;  %v340_v18 = vadd.f32 %v276_v51, %v146_v50  ;;  %v115_v6 = vmul.f32 %v2164_v8, %v50_v46  ;;  %v213_v49 = vld [vmem:[%s3500_s2 + $0x170] sm:$0xff]  ;;  %v52_v58 = vld [vmem:[%s3499_s1 + $0x78] sm:$0xff] }
  0x54   :  { %v1890_v7 = vpop.eup %1889  ;;  %1911 = vrcp.f32 %v786_v59  ;;  %v704_v9 = vmul.f32 1.442695, %v597_v63  ;;  %v245_v10 = vmul.f32 %v2176_v13, %v180_v53  ;;  %v439_v41 = vmul.f32 %v2187_v19, %v374_v57  ;;  %v407_v50 = vld [vmem:[%s3501_s3 + $0x170] sm:$0xff] }
  0x55   :  { %v1892_v14 = vpop.eup %1891  ;;  %v879_v15 = vmul.f32 %v1890_v7, %v2338_v0  ;;  %1913 = vrcp.f32 %v755_v2  ;;  %v566_v16 = vsub.f32 0.0, %v2562_v3  ;;  %v2578_v17 = vadd.f32 %v470_v1, %v340_v18 }
  0x56   :  { %v911_v22 = vmul.f32 %v1892_v14, %v2351_v12  ;;  %1915 = vpow2.f32 %v704_v9  ;;  %v309_v23 = vadd.f32 %v245_v10, %v115_v6  ;;  %v147_v24 = vmul.f32 %v2164_v8, %v82_v40  ;;  %v182_v9 = vld [vmem:[%s3500_s2 + $0x78] sm:$0xff] }
  0x57   :  { %v1894_v0 = vpop.eup %1893  ;;  %1739 = vmatmul.mubr.msk.f32.gmra.mxu0 %vm946_vm1, %v879_v15  ;;  %v642_v25 = vmul.f32 1.442695, %v566_v16  ;;  %v598_v29 = vsub.f32 0.0, %v2578_v17  ;;  %v277_v54 = vmul.f32 %v2176_v13, %v212_v30  ;;  %v471_v47 = vmul.f32 %v2187_v19, %v406_v11  ;;  %v84_v14 = vld [vmem:[%s3499_s1 + $0x178] sm:$0xff] }
  0x58   :  { %v1896_v32 = vpop.eup %1895  ;;  %1787 = vmatmul.mubr.msk.f32.gmra.mxu1 %vm946_vm1, %v911_v22  ;;  %v880_v12 = vmul.f32 %v1894_v0, %v2360_v27  ;;  %v2597_v33 = vadd.f32 %v439_v41, %v309_v23  ;;  %v116_v34 = vmul.f32 %v2164_v8, %v51_v20  ;;  %v246_v35 = vmul.f32 %v2176_v13, %v181_v42  ;;  %v214_v22 = vld [vmem:[%s3500_s2 + $0x178] sm:$0xff] }
  0x59   :  { %v1898_v37 = vpop.eup %1897  ;;  %v787_v38 = vadd.f32 1.0, %v1896_v32  ;;  %1917 = vpow2.f32 %v642_v25  ;;  %v706_v39 = vmul.f32 1.442695, %v598_v29  ;;  %v341_v60 = vadd.f32 %v277_v54, %v147_v24  ;;  %v408_v25 = vld [vmem:[%s3501_s3 + $0x178] sm:$0xff] }
  0x5a   :  { %v1900_v43 = vpop.eup %1899  ;;  %1741 = vmatprep.mubr.msk.f32.mxu0 %vm946_vm1, %v880_v12  ;;  %v912_v27 = vmul.f32 %v1898_v37, %v2370_v44  ;;  %v567_v45 = vsub.f32 0.0, %v2597_v33  ;;  %v310_v46 = vadd.f32 %v246_v35, %v116_v34  ;;  %v440_v48 = vmul.f32 %v2187_v19, %v375_v31  ;;  %v53_v31 = vld [vmem:[%s3499_s1 + $0x80] sm:$0xff] }
  0x5b   :  { %v1902_v51 = vpop.eup %1901  ;;  %v881_v53 = vmul.f32 %v1900_v43, %v2387_v61  ;;  %1919 = vrcp.f32 %v787_v38  ;;  %v2615_v57 = vadd.f32 %v471_v47, %v341_v60  ;;  %v148_v44 = vmul.f32 %v2164_v8, %v83_v36  ;;  %v183_v36 = vld [vmem:[%s3500_s2 + $0x80] sm:$0xff] }
  0x5c   :  { %v1904_v59 = vpop.eup %1903  ;;  %1789 = vmatprep.mubr.msk.f32.mxu1 %vm946_vm1, %v912_v27  ;;  %v756_v63 = vadd.f32 1.0, %v1902_v51  ;;  %1921 = vpow2.f32 %v706_v39  ;;  %v644_v1 = vmul.f32 1.442695, %v567_v45  ;;  %v2622_v2 = vadd.f32 %v440_v48, %v310_v46  ;;  %v377_v37 = vld [vmem:[%s3501_s3 + $0x80] sm:$0xff] }
  0x5d   :  { %v1906_v18 = vpop.eup %1905  ;;  %1742 = vmatmul.mubr.msk.f32.gmra.mxu0 %vm946_vm1, %v881_v53  ;;  %v913_v61 = vmul.f32 %v1904_v59, %v2414_v26  ;;  %v599_v6 = vsub.f32 0.0, %v2615_v57  ;;  %v278_v40 = vmul.f32 %v2176_v13, %v213_v49  ;;  %v472_v7 = vmul.f32 %v2187_v19, %v407_v50  ;;  %v376_v26 = vld [vmem:[%s3501_s3 + $0x78] sm:$0xff]  ;;  %v85_v38 = vld [vmem:[%s3499_s1 + $0x180] sm:$0xff] }
  0x5e   :  { %v1908_v10 = vpop.eup %1907  ;;  %1923 = vrcp.f32 %v756_v63  ;;  %v788_v41 = vadd.f32 1.0, %v1906_v18  ;;  %v568_v30 = vsub.f32 0.0, %v2622_v2  ;;  %v117_v11 = vmul.f32 %v2164_v8, %v52_v58  ;;  %v215_v27 = vld [vmem:[%s3500_s2 + $0x180] sm:$0xff]  ;;  %v54_v58 = vld [vmem:[%s3499_s1 + $0x88] sm:$0xff] }
  0x5f   :  { %v1910_v15 = vpop.eup %1909  ;;  %1790 = vmatmul.mubr.msk.f32.gmra.mxu1 %vm946_vm1, %v913_v61  ;;  %v882_v16 = vmul.f32 %v1908_v10, %v2416_v28  ;;  %1925 = vpow2.f32 %v644_v1  ;;  %v708_v20 = vmul.f32 1.442695, %v599_v6  ;;  %v342_v42 = vadd.f32 %v278_v40, %v148_v44  ;;  %v184_v61 = vld [vmem:[%s3500_s2 + $0x88] sm:$0xff] }
  0x60   :  { %1927 = vrcp.f32 %v788_v41  ;;  %v757_v23 = vadd.f32 1.0, %v1910_v15  ;;  %v646_v24 = vmul.f32 1.442695, %v568_v30  ;;  %v247_v0 = vmul.f32 %v2176_v13, %v182_v9 }
  0x61   :  { %v1912_v29 = vpop.eup %1911  ;;  %1744 = vmatprep.mubr.msk.f32.mxu0 %vm946_vm1, %v882_v16  ;;  %1929 = vpow2.f32 %v708_v20  ;;  %v2650_v28 = vadd.f32 %v472_v7, %v342_v42  ;;  %v441_v54 = vmul.f32 %v2187_v19, %v376_v26  ;;  %v149_v47 = vmul.f32 %v2164_v8, %v84_v14  ;;  %v378_v26 = vld [vmem:[%s3501_s3 + $0x88] sm:$0xff] }
  0x62   :  { %v1914_v32 = vpop.eup %1913  ;;  %v914_v12 = vmul.f32 %v1912_v29, %v2434_v56  ;;  %1931 = vrcp.f32 %v757_v23  ;;  %v311_v34 = vadd.f32 %v247_v0, %v117_v11  ;;  %v279_v35 = vmul.f32 %v2176_v13, %v214_v22  ;;  %v86_v14 = vld [vmem:[%s3499_s1 + $0x188] sm:$0xff] }
  0x63   :  { %v1916_v39 = vpop.eup %1915  ;;  %v883_v60 = vmul.f32 %v1914_v32, %v2440_v62  ;;  %1933 = vpow2.f32 %v646_v24  ;;  %v600_v56 = vsub.f32 0.0, %v2650_v28  ;;  %v473_v43 = vmul.f32 %v2187_v19, %v408_v25  ;;  %v409_v62 = vld [vmem:[%s3501_s3 + $0x180] sm:$0xff]  ;;  %v216_v22 = vld [vmem:[%s3500_s2 + $0x188] sm:$0xff] }
  0x64   :  { %1792 = vmatprep.mubr.msk.f32.mxu1 %vm946_vm1, %v914_v12  ;;  %v789_v45 = vadd.f32 1.0, %v1916_v39  ;;  %v2675_v46 = vadd.f32 %v441_v54, %v311_v34  ;;  %v343_v48 = vadd.f32 %v279_v35, %v149_v47  ;;  %v118_v49 = vmul.f32 %v2164_v8, %v53_v31  ;;  %v410_v31 = vld [vmem:[%s3501_s3 + $0x188] sm:$0xff] }
  0x65   :  { %1745 = vmatmul.mubr.msk.f32.gmra.mxu0 %vm946_vm1, %v883_v60  ;;  %v710_v50 = vmul.f32 1.442695, %v600_v56  ;;  %v248_v51 = vmul.f32 %v2176_v13, %v183_v36  ;;  %v442_v53 = vmul.f32 %v2187_v19, %v377_v37  ;;  %v150_v44 = vmul.f32 %v2164_v8, %v85_v38  ;;  %v55_v36 = vld [vmem:[%s3499_s1 + $0x90] sm:$0xff] }
  0x66   :  { %v1918_v59 = vpop.eup %1917  ;;  %1935 = vrcp.f32 %v789_v45  ;;  %v569_v63 = vsub.f32 0.0, %v2675_v46  ;;  %v2689_v1 = vadd.f32 %v473_v43, %v343_v48  ;;  %v280_v18 = vmul.f32 %v2176_v13, %v215_v27  ;;  %v185_v56 = vld [vmem:[%s3500_s2 + $0x90] sm:$0xff] }
  0x67   :  { %v758_v6 = vadd.f32 1.0, %v1918_v59  ;;  %1937 = vpow2.f32 %v710_v50  ;;  %v312_v40 = vadd.f32 %v248_v51, %v118_v49  ;;  %v474_v7 = vmul.f32 %v2187_v19, %v409_v62  ;;  %v379_v49 = vld [vmem:[%s3501_s3 + $0x90] sm:$0xff] }
  0x68   :  { %v1920_v9 = vpop.eup %1919  ;;  %v648_v10 = vmul.f32 1.442695, %v569_v63  ;;  %v601_v41 = vsub.f32 0.0, %v2689_v1  ;;  %v344_v30 = vadd.f32 %v280_v18, %v150_v44  ;;  %v119_v11 = vmul.f32 %v2164_v8, %v54_v58  ;;  %v87_v44 = vld [vmem:[%s3499_s1 + $0x190] sm:$0xff] }
  0x69   :  { %v1922_v15 = vpop.eup %1921  ;;  %v915_v16 = vmul.f32 %v1920_v9, %v2480_v55  ;;  %1939 = vrcp.f32 %v758_v6  ;;  %v2705_v20 = vadd.f32 %v442_v53, %v312_v40  ;;  %v249_v42 = vmul.f32 %v2176_v13, %v184_v61  ;;  %v217_v18 = vld [vmem:[%s3500_s2 + $0x190] sm:$0xff]  ;;  %v56_v6 = vld [vmem:[%s3499_s1 + $0x98] sm:$0xff] }
  0x6a   :  { %v790_v23 = vadd.f32 1.0, %v1922_v15  ;;  %1941 = vpow2.f32 %v648_v10  ;;  %v712_v24 = vmul.f32 1.442695, %v601_v41  ;;  %v2711_v0 = vadd.f32 %v474_v7, %v344_v30  ;;  %v411_v61 = vld [vmem:[%s3501_s3 + $0x190] sm:$0xff]  ;;  %v186_v30 = vld [vmem:[%s3500_s2 + $0x98] sm:$0xff] }
  0x6b   :  { %v1924_v25 = vpop.eup %1923  ;;  %1793 = vmatmul.mubr.msk.f32.gmra.mxu1 %vm946_vm1, %v915_v16  ;;  %v570_v29 = vsub.f32 0.0, %v2705_v20  ;;  %v313_v55 = vadd.f32 %v249_v42, %v119_v11  ;;  %v443_v54 = vmul.f32 %v2187_v19, %v378_v26  ;;  %v151_v47 = vmul.f32 %v2164_v8, %v86_v14  ;;  %v380_v11 = vld [vmem:[%s3501_s3 + $0x98] sm:$0xff] }
  0x6c   :  { %v1926_v32 = vpop.eup %1925  ;;  %v884_v12 = vmul.f32 %v1924_v25, %v2496_v52  ;;  %1943 = vrcp.f32 %v790_v23  ;;  %v602_v34 = vsub.f32 0.0, %v2711_v0  ;;  %v281_v35 = vmul.f32 %v2176_v13, %v216_v22  ;;  %v88_v42 = vld [vmem:[%s3499_s1 + $0x198] sm:$0xff] }
  0x6d   :  { %v1928_v37 = vpop.eup %1927  ;;  %v759_v38 = vadd.f32 1.0, %v1926_v32  ;;  %1945 = vpow2.f32 %v712_v24  ;;  %v650_v39 = vmul.f32 1.442695, %v570_v29  ;;  %v2726_v60 = vadd.f32 %v443_v54, %v313_v55  ;;  %v218_v22 = vld [vmem:[%s3500_s2 + $0x198] sm:$0xff] }
  0x6e   :  { %v1930_v52 = vpop.eup %1929  ;;  %1747 = vmatprep.mubr.msk.f32.mxu0 %vm946_vm1, %v884_v12  ;;  %v916_v43 = vmul.f32 %v1928_v37, %v2505_v5  ;;  %v714_v27 = vmul.f32 1.442695, %v602_v34  ;;  %v345_v45 = vadd.f32 %v281_v35, %v151_v47  ;;  %v475_v48 = vmul.f32 %v2187_v19, %v410_v31  ;;  %v412_v32 = vld [vmem:[%s3501_s3 + $0x198] sm:$0xff]  ;;  %v187_v37 = vld [vmem:[%s3500_s2 + $0xa0] sm:$0xff] }
  0x6f   :  { %v1932_v62 = vpop.eup %1931  ;;  %1947 = vrcp.f32 %v759_v38  ;;  %v791_v50 = vadd.f32 1.0, %v1930_v52  ;;  %v571_v51 = vsub.f32 0.0, %v2726_v60  ;;  %v120_v53 = vmul.f32 %v2164_v8, %v55_v36  ;;  %v57_v36 = vld [vmem:[%s3499_s1 + $0xa0] sm:$0xff] }
  0x70   :  { %v1934_v5 = vpop.eup %1933  ;;  %1795 = vmatprep.mubr.msk.f32.mxu1 %vm946_vm1, %v916_v43  ;;  %v885_v58 = vmul.f32 %v1932_v62, %v2518_v21  ;;  %1949 = vpow2.f32 %v650_v39  ;;  %v2744_v59 = vadd.f32 %v475_v48, %v345_v45  ;;  %v250_v63 = vmul.f32 %v2176_v13, %v185_v56  ;;  %v381_v43 = vld [vmem:[%s3501_s3 + $0xa0] sm:$0xff] }
  0x71   :  { %1951 = vrcp.f32 %v791_v50  ;;  %v760_v40 = vadd.f32 1.0, %v1934_v5  ;;  %v652_v21 = vmul.f32 1.442695, %v571_v51  ;;  %v444_v7 = vmul.f32 %v2187_v19, %v379_v49  ;;  %v219_v5 = vld [vmem:[%s3500_s2 + $0x1a0] sm:$0xff] }
  0x72   :  { %1748 = vmatmul.mubr.msk.f32.gmra.mxu0 %vm946_vm1, %v885_v58  ;;  %1953 = vpow2.f32 %v714_v27  ;;  %v603_v9 = vsub.f32 0.0, %v2744_v59  ;;  %v314_v10 = vadd.f32 %v250_v63, %v120_v53  ;;  %v152_v41 = vmul.f32 %v2164_v8, %v87_v44  ;;  %v89_v44 = vld [vmem:[%s3499_s1 + $0x1a0] sm:$0xff] }
  0x73   :  { %v1936_v26 = vpop.eup %1935  ;;  %1955 = vrcp.f32 %v760_v40  ;;  %v282_v14 = vmul.f32 %v2176_v13, %v217_v18  ;;  %v476_v15 = vmul.f32 %v2187_v19, %v411_v61  ;;  %v121_v16 = vmul.f32 %v2164_v8, %v56_v6  ;;  %v413_v6 = vld [vmem:[%s3501_s3 + $0x1a0] sm:$0xff] }
  0x74   :  { %v1938_v23 = vpop.eup %1937  ;;  %v917_v24 = vmul.f32 %v1936_v26, %v2546_v4  ;;  %1957 = vpow2.f32 %v652_v21  ;;  %v716_v25 = vmul.f32 1.442695, %v603_v9  ;;  %v2776_v29 = vadd.f32 %v444_v7, %v314_v10 }
  0x75   :  { %v792_v55 = vadd.f32 1.0, %v1938_v23  ;;  %v346_v54 = vadd.f32 %v282_v14, %v152_v41  ;;  %v251_v47 = vmul.f32 %v2176_v13, %v186_v30  ;;  %v445_v31 = vmul.f32 %v2187_v19, %v380_v11  ;;  %v58_v11 = vld [vmem:[%s3499_s1 + $0xa8] sm:$0xff] }
  0x76   :  { %v1940_v12 = vpop.eup %1939  ;;  %1796 = vmatmul.mubr.msk.f32.gmra.mxu1 %vm946_vm1, %v917_v24  ;;  %1959 = vpow2.f32 %v716_v25  ;;  %v572_v4 = vsub.f32 0.0, %v2776_v29  ;;  %v153_v34 = vmul.f32 %v2164_v8, %v88_v42  ;;  %v283_v35 = vmul.f32 %v2176_v13, %v218_v22  ;;  %v188_v42 = vld [vmem:[%s3500_s2 + $0xa8] sm:$0xff] }
  0x77   :  { %v1942_v38 = vpop.eup %1941  ;;  %v886_v39 = vmul.f32 %v1940_v12, %v2562_v3  ;;  %1961 = vrcp.f32 %v792_v55  ;;  %v2794_v56 = vadd.f32 %v476_v15, %v346_v54  ;;  %v315_v52 = vadd.f32 %v251_v47, %v121_v16  ;;  %v382_v55 = vld [vmem:[%s3501_s3 + $0xa8] sm:$0xff] }
  0x78   :  { %v761_v27 = vadd.f32 1.0, %v1942_v38  ;;  %v654_v45 = vmul.f32 1.442695, %v572_v4  ;;  %v347_v48 = vadd.f32 %v283_v35, %v153_v34  ;;  %v477_v49 = vmul.f32 %v2187_v19, %v412_v32  ;;  %v90_v35 = vld [vmem:[%s3499_s1 + $0x1a8] sm:$0xff] }
  0x79   :  { %v1944_v62 = vpop.eup %1943  ;;  %1750 = vmatprep.mubr.msk.f32.mxu0 %vm946_vm1, %v886_v39  ;;  %v604_v50 = vsub.f32 0.0, %v2794_v56  ;;  %v2802_v51 = vadd.f32 %v445_v31, %v315_v52  ;;  %v122_v3 = vmul.f32 %v2164_v8, %v57_v36  ;;  %v252_v53 = vmul.f32 %v2176_v13, %v187_v37  ;;  %v220_v36 = vld [vmem:[%s3500_s2 + $0x1a8] sm:$0xff] }
  0x7a   :  { %v1946_v58 = vpop.eup %1945  ;;  %v918_v63 = vmul.f32 %v1944_v62, %v2578_v17  ;;  %1963 = vrcp.f32 %v761_v27  ;;  %v2813_v18 = vadd.f32 %v477_v49, %v347_v48  ;;  %v446_v61 = vmul.f32 %v2187_v19, %v381_v43  ;;  %v59_v43 = vld [vmem:[%s3499_s1 + $0xb0] sm:$0xff] }
  0x7b   :  { %v793_v40 = vadd.f32 1.0, %v1946_v58  ;;  %1965 = vpow2.f32 %v654_v45  ;;  %v718_v21 = vmul.f32 1.442695, %v604_v50  ;;  %v573_v7 = vsub.f32 0.0, %v2802_v51 }
  0x7c   :  { %v1948_v9 = vpop.eup %1947  ;;  %1798 = vmatprep.mubr.msk.f32.mxu1 %vm946_vm1, %v918_v63  ;;  %v605_v10 = vsub.f32 0.0, %v2813_v18  ;;  %v316_v17 = vadd.f32 %v252_v53, %v122_v3  ;;  %v154_v41 = vmul.f32 %v2164_v8, %v89_v44  ;;  %v284_v30 = vmul.f32 %v2176_v13, %v219_v5  ;;  %v189_v53 = vld [vmem:[%s3500_s2 + $0xb0] sm:$0xff] }
  0x7d   :  { %v1950_v26 = vpop.eup %1949  ;;  %v887_v14 = vmul.f32 %v1948_v9, %v2597_v33  ;;  %1967 = vrcp.f32 %v793_v40  ;;  %v656_v15 = vmul.f32 1.442695, %v573_v7  ;;  %v478_v16 = vmul.f32 %v2187_v19, %v413_v6  ;;  %v383_v44 = vld [vmem:[%s3501_s3 + $0xb0] sm:$0xff] }
  0x7e   :  { %v1952_v22 = vpop.eup %1951  ;;  %v762_v23 = vadd.f32 1.0, %v1950_v26  ;;  %1969 = vpow2.f32 %v718_v21  ;;  %v720_v24 = vmul.f32 1.442695, %v605_v10  ;;  %v2832_v25 = vadd.f32 %v446_v61, %v316_v17  ;;  %v91_v6 = vld [vmem:[%s3499_s1 + $0x1b0] sm:$0xff] }
  0x7f   :  { %v1954_v54 = vpop.eup %1953  ;;  %1751 = vmatmul.mubr.msk.f32.gmra.mxu0 %vm946_vm1, %v887_v14  ;;  %v919_v33 = vmul.f32 %v1952_v22, %v2615_v57  ;;  %1971 = vpow2.f32 %v656_v15  ;;  %v348_v47 = vadd.f32 %v284_v30, %v154_v41  ;;  %v123_v31 = vmul.f32 %v2164_v8, %v58_v11  ;;  %v414_v57 = vld [vmem:[%s3501_s3 + $0x1a8] sm:$0xff]  ;;  %v221_v40 = vld [vmem:[%s3500_s2 + $0x1b0] sm:$0xff]  ;;  %v60_v11 = vld [vmem:[%s3499_s1 + $0xb8] sm:$0xff] }
  0x80   :  { %v1956_v32 = vpop.eup %1955  ;;  %1973 = vrcp.f32 %v762_v23  ;;  %v794_v12 = vadd.f32 1.0, %v1954_v54  ;;  %v574_v4 = vsub.f32 0.0, %v2832_v25  ;;  %v253_v34 = vmul.f32 %v2176_v13, %v188_v42  ;;  %v415_v10 = vld [vmem:[%s3501_s3 + $0x1b0] sm:$0xff]  ;;  %v384_v42 = vld [vmem:[%s3501_s3 + $0xb8] sm:$0xff] }
  0x81   :  { %v1958_v37 = vpop.eup %1957  ;;  %1799 = vmatmul.mubr.msk.f32.gmra.mxu1 %vm946_vm1, %v919_v33  ;;  %v888_v38 = vmul.f32 %v1956_v32, %v2622_v2  ;;  %1975 = vpow2.f32 %v720_v24  ;;  %v2853_v39 = vadd.f32 %v478_v16, %v348_v47  ;;  %v447_v52 = vmul.f32 %v2187_v19, %v382_v55  ;;  %v190_v16 = vld [vmem:[%s3500_s2 + $0xb8] sm:$0xff] }
  0x82   :  { %1977 = vrcp.f32 %v794_v12  ;;  %v763_v27 = vadd.f32 1.0, %v1958_v37  ;;  %v658_v45 = vmul.f32 1.442695, %v574_v4  ;;  %v317_v48 = vadd.f32 %v253_v34, %v123_v31  ;;  %v92_v12 = vld [vmem:[%s3499_s1 + $0x1b8] sm:$0xff] }
  0x83   :  { %v1960_v49 = vpop.eup %1959  ;;  %1753 = vmatprep.mubr.msk.f32.mxu0 %vm946_vm1, %v888_v38  ;;  %v606_v62 = vsub.f32 0.0, %v2853_v39  ;;  %v155_v2 = vmul.f32 %v2164_v8, %v90_v35  ;;  %v285_v50 = vmul.f32 %v2176_v13, %v220_v36  ;;  %v479_v3 = vmul.f32 %v2187_v19, %v414_v57  ;;  %v222_v36 = vld [vmem:[%s3500_s2 + $0x1b8] sm:$0xff] }
  0x84   :  { %v1962_v5 = vpop.eup %1961  ;;  %1979 = vrcp.f32 %v763_v27  ;;  %v795_v58 = vadd.f32 1.0, %v1960_v49  ;;  %v2870_v63 = vadd.f32 %v447_v52, %v317_v48  ;;  %v124_v61 = vmul.f32 %v2164_v8, %v59_v43 }
  0x85   :  { %v920_v21 = vmul.f32 %v1962_v5, %v2650_v28  ;;  %1981 = vpow2.f32 %v658_v45  ;;  %v722_v7 = vmul.f32 1.442695, %v606_v62  ;;  %v349_v9 = vadd.f32 %v285_v50, %v155_v2 }
  0x86   :  { %1983 = vrcp.f32 %v795_v58  ;;  %v575_v17 = vsub.f32 0.0, %v2870_v63  ;;  %v254_v41 = vmul.f32 %v2176_v13, %v189_v53  ;;  %v448_v30 = vmul.f32 %v2187_v19, %v383_v44 }
  0x87   :  { %v1964_v26 = vpop.eup %1963  ;;  %1801 = vmatprep.mubr.msk.f32.mxu1 %vm946_vm1, %v920_v21  ;;  %1985 = vpow2.f32 %v722_v7  ;;  %v2890_v28 = vadd.f32 %v479_v3, %v349_v9  ;;  %v156_v14 = vmul.f32 %v2164_v8, %v91_v6  ;;  %v286_v15 = vmul.f32 %v2176_v13, %v221_v40  ;;  %v416_v3 = vld [vmem:[%s3501_s3 + $0x1b8] sm:$0xff]  ;;  %v191_v6 = vld [vmem:[%s3500_s2 + $0xc0] sm:$0xff] }
  0x88   :  { %v1966_v22 = vpop.eup %1965  ;;  %v889_v23 = vmul.f32 %v1964_v26, %v2675_v46  ;;  %v660_v24 = vmul.f32 1.442695, %v575_v17  ;;  %v318_v55 = vadd.f32 %v254_v41, %v124_v61  ;;  %v480_v54 = vmul.f32 %v2187_v19, %v415_v10  ;;  %v61_v61 = vld [vmem:[%s3499_s1 + $0xc0] sm:$0xff] }
  0x89   :  { %v764_v33 = vadd.f32 1.0, %v1966_v22  ;;  %v607_v47 = vsub.f32 0.0, %v2890_v28  ;;  %v350_v31 = vadd.f32 %v286_v15, %v156_v14  ;;  %v125_v32 = vmul.f32 %v2164_v8, %v60_v11  ;;  %v385_v40 = vld [vmem:[%s3501_s3 + $0xc0] sm:$0xff] }
  0x8a   :  { %v1968_v4 = vpop.eup %1967  ;;  %1754 = vmatmul.mubr.msk.f32.gmra.mxu0 %vm946_vm1, %v889_v23  ;;  %1987 = vpow2.f32 %v660_v24  ;;  %v2908_v34 = vadd.f32 %v448_v30, %v318_v55  ;;  %v255_v46 = vmul.f32 %v2176_v13, %v190_v16  ;;  %v449_v35 = vmul.f32 %v2187_v19, %v384_v42  ;;  %v93_v30 = vld [vmem:[%s3499_s1 + $0x1c0] sm:$0xff] }
  0x8b   :  { %v1970_v57 = vpop.eup %1969  ;;  %v921_v37 = vmul.f32 %v1968_v4, %v2689_v1  ;;  %1989 = vrcp.f32 %v764_v33  ;;  %v724_v38 = vmul.f32 1.442695, %v607_v47  ;;  %v2916_v52 = vadd.f32 %v480_v54, %v350_v31  ;;  %v223_v11 = vld [vmem:[%s3500_s2 + $0x1c0] sm:$0xff] }
  0x8c   :  { %v1972_v43 = vpop.eup %1971  ;;  %v796_v27 = vadd.f32 1.0, %v1970_v57  ;;  %v576_v45 = vsub.f32 0.0, %v2908_v34  ;;  %v319_v48 = vadd.f32 %v255_v46, %v125_v32  ;;  %v157_v49 = vmul.f32 %v2164_v8, %v92_v12  ;;  %v417_v16 = vld [vmem:[%s3501_s3 + $0x1c0] sm:$0xff]  ;;  %v62_v32 = vld [vmem:[%s3499_s1 + $0xc8] sm:$0xff] }
  0x8d   :  { %v1974_v62 = vpop.eup %1973  ;;  %1802 = vmatmul.mubr.msk.f32.gmra.mxu1 %vm946_vm1, %v921_v37  ;;  %v765_v2 = vadd.f32 1.0, %v1972_v43  ;;  %1991 = vpow2.f32 %v724_v38  ;;  %v608_v50 = vsub.f32 0.0, %v2916_v52  ;;  %v287_v1 = vmul.f32 %v2176_v13, %v222_v36  ;;  %v192_v12 = vld [vmem:[%s3500_s2 + $0xc8] sm:$0xff] }
  0x8e   :  { %v1976_v53 = vpop.eup %1975  ;;  %v890_v44 = vmul.f32 %v1974_v62, %v2705_v20  ;;  %1993 = vrcp.f32 %v796_v27  ;;  %v662_v5 = vmul.f32 1.442695, %v576_v45  ;;  %v2927_v58 = vadd.f32 %v449_v35, %v319_v48  ;;  %v94_v57 = vld [vmem:[%s3499_s1 + $0x1c8] sm:$0xff] }
  0x8f   :  { %v1978_v21 = vpop.eup %1977  ;;  %1995 = vrcp.f32 %v765_v2  ;;  %v797_v7 = vadd.f32 1.0, %v1976_v53  ;;  %v726_v20 = vmul.f32 1.442695, %v608_v50  ;;  %v351_v9 = vadd.f32 %v287_v1, %v157_v49  ;;  %v224_v27 = vld [vmem:[%s3500_s2 + $0x1c8] sm:$0xff]  ;;  %v63_v53 = vld [vmem:[%s3499_s1 + $0xd0] sm:$0xff] }
  0x90   :  { %1756 = vmatprep.mubr.msk.f32.mxu0 %vm946_vm1, %v890_v44  ;;  %v922_v10 = vmul.f32 %v1978_v21, %v2711_v0  ;;  %1997 = vpow2.f32 %v662_v5  ;;  %v577_v17 = vsub.f32 0.0, %v2927_v58  ;;  %v481_v41 = vmul.f32 %v2187_v19, %v416_v3  ;;  %v418_v62 = vld [vmem:[%s3501_s3 + $0x1c8] sm:$0xff] }
  0x91   :  { %v1980_v26 = vpop.eup %1979  ;;  %1999 = vrcp.f32 %v797_v7  ;;  %v126_v14 = vmul.f32 %v2164_v8, %v61_v61  ;;  %v256_v15 = vmul.f32 %v2176_v13, %v191_v6  ;;  %v450_v0 = vmul.f32 %v2187_v19, %v385_v40  ;;  %v193_v40 = vld [vmem:[%s3500_s2 + $0xd0] sm:$0xff] }
  0x92   :  { %v1982_v42 = vpop.eup %1981  ;;  %1804 = vmatprep.mubr.msk.f32.mxu1 %vm946_vm1, %v922_v10  ;;  %v891_v22 = vmul.f32 %v1980_v26, %v2726_v60  ;;  %2001 = vpow2.f32 %v726_v20  ;;  %v664_v23 = vmul.f32 1.442695, %v577_v17  ;;  %v2956_v24 = vadd.f32 %v481_v41, %v351_v9  ;;  %v386_v60 = vld [vmem:[%s3501_s3 + $0xc8] sm:$0xff]  ;;  %v387_v10 = vld [vmem:[%s3501_s3 + $0xd0] sm:$0xff] }
  0x93   :  { %v1984_v55 = vpop.eup %1983  ;;  %v766_v54 = vadd.f32 1.0, %v1982_v42  ;;  %v320_v33 = vadd.f32 %v256_v15, %v126_v14  ;;  %v158_v47 = vmul.f32 %v2164_v8, %v93_v30  ;;  %v288_v31 = vmul.f32 %v2176_v13, %v223_v11 }
  0x94   :  { %v1986_v4 = vpop.eup %1985  ;;  %1757 = vmatmul.mubr.msk.f32.gmra.mxu0 %vm946_vm1, %v891_v22  ;;  %v923_v46 = vmul.f32 %v1984_v55, %v2744_v59  ;;  %2003 = vpow2.f32 %v664_v23  ;;  %v609_v35 = vsub.f32 0.0, %v2956_v24  ;;  %v482_v36 = vmul.f32 %v2187_v19, %v417_v16 }
  0x95   :  { %2005 = vrcp.f32 %v766_v54  ;;  %v798_v37 = vadd.f32 1.0, %v1986_v4  ;;  %v2976_v38 = vadd.f32 %v450_v0, %v320_v33  ;;  %v352_v43 = vadd.f32 %v288_v31, %v158_v47  ;;  %v225_v54 = vld [vmem:[%s3500_s2 + $0x1d0] sm:$0xff] }
  0x96   :  { %1805 = vmatmul.mubr.msk.f32.gmra.mxu1 %vm946_vm1, %v923_v46  ;;  %v728_v59 = vmul.f32 1.442695, %v609_v35  ;;  %v127_v45 = vmul.f32 %v2164_v8, %v62_v32  ;;  %v257_v48 = vmul.f32 %v2176_v13, %v192_v12  ;;  %v451_v49 = vmul.f32 %v2187_v19, %v386_v60  ;;  %v419_v33 = vld [vmem:[%s3501_s3 + $0x1d0] sm:$0xff]  ;;  %v64_v12 = vld [vmem:[%s3499_s1 + $0xd8] sm:$0xff] }
  0x97   :  { %v1988_v2 = vpop.eup %1987  ;;  %2007 = vrcp.f32 %v798_v37  ;;  %v578_v50 = vsub.f32 0.0, %v2976_v38  ;;  %v2989_v1 = vadd.f32 %v482_v36, %v352_v43  ;;  %v159_v3 = vmul.f32 %v2164_v8, %v94_v57 }
  0x98   :  { %v1990_v44 = vpop.eup %1989  ;;  %v767_v5 = vadd.f32 1.0, %v1988_v2  ;;  %2009 = vpow2.f32 %v728_v59  ;;  %v321_v61 = vadd.f32 %v257_v48, %v127_v45  ;;  %v289_v6 = vmul.f32 %v2176_v13, %v224_v27  ;;  %v388_v59 = vld [vmem:[%s3501_s3 + $0xd8] sm:$0xff] }
  0x99   :  { %v892_v21 = vmul.f32 %v1990_v44, %v2776_v29  ;;  %v666_v7 = vmul.f32 1.442695, %v578_v50  ;;  %v610_v20 = vsub.f32 0.0, %v2989_v1  ;;  %v483_v9 = vmul.f32 %v2187_v19, %v418_v62  ;;  %v95_v29 = vld [vmem:[%s3499_s1 + $0x1d0] sm:$0xff]  ;;  %v96_v45 = vld [vmem:[%s3499_s1 + $0x1d8] sm:$0xff] }
  0x9a   :  { %v1992_v17 = vpop.eup %1991  ;;  %2011 = vrcp.f32 %v767_v5  ;;  %v3005_v41 = vadd.f32 %v451_v49, %v321_v61  ;;  %v353_v30 = vadd.f32 %v289_v6, %v159_v3  ;;  %v128_v11 = vmul.f32 %v2164_v8, %v63_v53  ;;  %v226_v53 = vld [vmem:[%s3500_s2 + $0x1d8] sm:$0xff] }
  0x9b   :  { %v1994_v26 = vpop.eup %1993  ;;  %1759 = vmatprep.mubr.msk.f32.mxu0 %vm946_vm1, %v892_v21  ;;  %v799_v14 = vadd.f32 1.0, %v1992_v17  ;;  %2013 = vpow2.f32 %v666_v7  ;;  %v730_v15 = vmul.f32 1.442695, %v610_v20  ;;  %v258_v0 = vmul.f32 %v2176_v13, %v193_v40  ;;  %v420_v44 = vld [vmem:[%s3501_s3 + $0x1d8] sm:$0xff]  ;;  %v65_v21 = vld [vmem:[%s3499_s1 + $0xe0] sm:$0xff] }
  0x9c   :  { %v1996_v16 = vpop.eup %1995  ;;  %v924_v42 = vmul.f32 %v1994_v26, %v2794_v56  ;;  %v579_v22 = vsub.f32 0.0, %v3005_v41  ;;  %v3015_v23 = vadd.f32 %v483_v9, %v353_v30  ;;  %v452_v55 = vmul.f32 %v2187_v19, %v387_v10  ;;  %v195_v10 = vld [vmem:[%s3500_s2 + $0xe0] sm:$0xff] }
  0x9d   :  { %v1998_v47 = vpop.eup %1997  ;;  %v893_v31 = vmul.f32 %v1996_v16, %v2802_v51  ;;  %2015 = vrcp.f32 %v799_v14  ;;  %v322_v32 = vadd.f32 %v258_v0, %v128_v11  ;;  %v160_v56 = vmul.f32 %v2164_v8, %v95_v29  ;;  %v194_v51 = vld [vmem:[%s3500_s2 + $0xd8] sm:$0xff]  ;;  %v389_v26 = vld [vmem:[%s3501_s3 + $0xe0] sm:$0xff] }
  0x9e   :  { %v2000_v60 = vpop.eup %1999  ;;  %1807 = vmatprep.mubr.msk.f32.mxu1 %vm946_vm1, %v924_v42  ;;  %v768_v4 = vadd.f32 1.0, %v1998_v47  ;;  %2017 = vpow2.f32 %v730_v15  ;;  %v668_v46 = vmul.f32 1.442695, %v579_v22  ;;  %v611_v35 = vsub.f32 0.0, %v3015_v23  ;;  %v227_v14 = vld [vmem:[%s3500_s2 + $0x1e0] sm:$0xff] }
  0x9f   :  { %v2002_v36 = vpop.eup %2001  ;;  %1760 = vmatmul.mubr.msk.f32.gmra.mxu0 %vm946_vm1, %v893_v31  ;;  %v925_v57 = vmul.f32 %v2000_v60, %v2813_v18  ;;  %v3036_v37 = vadd.f32 %v452_v55, %v322_v32  ;;  %v290_v43 = vmul.f32 %v2176_v13, %v225_v54  ;;  %v484_v27 = vmul.f32 %v2187_v19, %v419_v33  ;;  %v66_v60 = vld [vmem:[%s3499_s1 + $0xe8] sm:$0xff] }
  0xa0   :  { %2019 = vrcp.f32 %v768_v4  ;;  %v800_v48 = vadd.f32 1.0, %v2002_v36  ;;  %v732_v49 = vmul.f32 1.442695, %v611_v35  ;;  %v129_v62 = vmul.f32 %v2164_v8, %v64_v12  ;;  %v421_v12 = vld [vmem:[%s3501_s3 + $0x1e0] sm:$0xff]  ;;  %v196_v36 = vld [vmem:[%s3500_s2 + $0xe8] sm:$0xff] }
  0xa1   :  { %v2004_v18 = vpop.eup %2003  ;;  %1808 = vmatmul.mubr.msk.f32.gmra.mxu1 %vm946_vm1, %v925_v57  ;;  %2021 = vpow2.f32 %v668_v46  ;;  %v580_v2 = vsub.f32 0.0, %v3036_v37  ;;  %v354_v50 = vadd.f32 %v290_v43, %v160_v56  ;;  %v259_v3 = vmul.f32 %v2176_v13, %v194_v51 }
  0xa2   :  { %v2006_v5 = vpop.eup %2005  ;;  %2023 = vrcp.f32 %v800_v48  ;;  %v769_v61 = vadd.f32 1.0, %v2004_v18  ;;  %v453_v6 = vmul.f32 %v2187_v19, %v388_v59  ;;  %v161_v40 = vmul.f32 %v2164_v8, %v96_v45  ;;  %v98_v18 = vld [vmem:[%s3499_s1 + $0x1e8] sm:$0xff] }
  0xa3   :  { %v894_v7 = vmul.f32 %v2006_v5, %v2832_v25  ;;  %2025 = vpow2.f32 %v732_v49  ;;  %v670_v20 = vmul.f32 1.442695, %v580_v2  ;;  %v3062_v9 = vadd.f32 %v484_v27, %v354_v50  ;;  %v97_v25 = vld [vmem:[%s3499_s1 + $0x1e0] sm:$0xff] }
  0xa4   :  { %v2008_v17 = vpop.eup %2007  ;;  %2027 = vrcp.f32 %v769_v61  ;;  %v323_v30 = vadd.f32 %v259_v3, %v129_v62  ;;  %v291_v11 = vmul.f32 %v2176_v13, %v226_v53  ;;  %v485_v29 = vmul.f32 %v2187_v19, %v420_v44  ;;  %v390_v62 = vld [vmem:[%s3501_s3 + $0xe8] sm:$0xff] }
  0xa5   :  { %v2010_v15 = vpop.eup %2009  ;;  %1762 = vmatprep.mubr.msk.f32.mxu0 %vm946_vm1, %v894_v7  ;;  %v926_v0 = vmul.f32 %v2008_v17, %v2853_v39  ;;  %2029 = vpow2.f32 %v670_v20  ;;  %v612_v16 = vsub.f32 0.0, %v3062_v9  ;;  %v130_v42 = vmul.f32 %v2164_v8, %v65_v21  ;;  %v228_v44 = vld [vmem:[%s3500_s2 + $0x1e8] sm:$0xff] }
  0xa6   :  { %v801_v22 = vadd.f32 1.0, %v2010_v15  ;;  %v3082_v55 = vadd.f32 %v453_v6, %v323_v30  ;;  %v355_v54 = vadd.f32 %v291_v11, %v161_v40  ;;  %v260_v33 = vmul.f32 %v2176_v13, %v195_v10  ;;  %v422_v10 = vld [vmem:[%s3501_s3 + $0x1e8] sm:$0xff] }
  0xa7   :  { %v2012_v47 = vpop.eup %2011  ;;  %1810 = vmatprep.mubr.msk.f32.mxu1 %vm946_vm1, %v926_v0  ;;  %v734_v31 = vmul.f32 1.442695, %v612_v16  ;;  %v454_v32 = vmul.f32 %v2187_v19, %v389_v26  ;;  %v162_v56 = vmul.f32 %v2164_v8, %v97_v25  ;;  %v292_v39 = vmul.f32 %v2176_v13, %v227_v14  ;;  %v67_v26 = vld [vmem:[%s3499_s1 + $0xf0] sm:$0xff] }
  0xa8   :  { %v2014_v4 = vpop.eup %2013  ;;  %v895_v46 = vmul.f32 %v2012_v47, %v2870_v63  ;;  %2031 = vrcp.f32 %v801_v22  ;;  %v581_v35 = vsub.f32 0.0, %v3082_v55  ;;  %v3097_v51 = vadd.f32 %v485_v29, %v355_v54  ;;  %v197_v16 = vld [vmem:[%s3500_s2 + $0xf0] sm:$0xff] }
  0xa9   :  { %v770_v57 = vadd.f32 1.0, %v2014_v4  ;;  %2033 = vpow2.f32 %v734_v31  ;;  %v324_v43 = vadd.f32 %v260_v33, %v130_v42  ;;  %v356_v27 = vadd.f32 %v292_v39, %v162_v56  ;;  %v391_v47 = vld [vmem:[%s3501_s3 + $0xf0] sm:$0xff] }
  0xaa   :  { %v2016_v59 = vpop.eup %2015  ;;  %1763 = vmatmul.mubr.msk.f32.gmra.mxu0 %vm946_vm1, %v895_v46  ;;  %v672_v45 = vmul.f32 1.442695, %v581_v35  ;;  %v613_v48 = vsub.f32 0.0, %v3097_v51  ;;  %v486_v63 = vmul.f32 %v2187_v19, %v421_v12  ;;  %v131_v49 = vmul.f32 %v2164_v8, %v66_v60  ;;  %v99_v12 = vld [vmem:[%s3499_s1 + $0x1f0] sm:$0xff] }
  0xab   :  { %v2018_v2 = vpop.eup %2017  ;;  %v927_v50 = vmul.f32 %v2016_v59, %v2890_v28  ;;  %2035 = vrcp.f32 %v770_v57  ;;  %v3113_v3 = vadd.f32 %v454_v32, %v324_v43  ;;  %v261_v53 = vmul.f32 %v2176_v13, %v196_v36  ;;  %v229_v35 = vld [vmem:[%s3500_s2 + $0x1f0] sm:$0xff]  ;;  %v68_v57 = vld [vmem:[%s3499_s1 + $0xf8] sm:$0xff] }
  0xac   :  { %v802_v5 = vadd.f32 1.0, %v2018_v2  ;;  %2037 = vpow2.f32 %v672_v45  ;;  %v736_v61 = vmul.f32 1.442695, %v613_v48  ;;  %v3119_v6 = vadd.f32 %v486_v63, %v356_v27  ;;  %v423_v36 = vld [vmem:[%s3501_s3 + $0x1f0] sm:$0xff]  ;;  %v198_v63 = vld [vmem:[%s3500_s2 + $0xf8] sm:$0xff] }
  0xad   :  { %v2020_v40 = vpop.eup %2019  ;;  %1811 = vmatmul.mubr.msk.f32.gmra.mxu1 %vm946_vm1, %v927_v50  ;;  %v582_v21 = vsub.f32 0.0, %v3113_v3  ;;  %v325_v28 = vadd.f32 %v261_v53, %v131_v49  ;;  %v455_v7 = vmul.f32 %v2187_v19, %v390_v62  ;;  %v163_v20 = vmul.f32 %v2164_v8, %v98_v18  ;;  %v392_v49 = vld [vmem:[%s3501_s3 + $0xf8] sm:$0xff] }
  0xae   :  { %v2022_v17 = vpop.eup %2021  ;;  %v896_v30 = vmul.f32 %v2020_v40, %v2908_v34  ;;  %2039 = vrcp.f32 %v802_v5  ;;  %v614_v11 = vsub.f32 0.0, %v3119_v6  ;;  %v293_v29 = vmul.f32 %v2176_v13, %v228_v44  ;;  %v100_v53 = vld [vmem:[%s3499_s1 + $0x1f8] sm:$0xff] }
  0xaf   :  { %v2024_v25 = vpop.eup %2023  ;;  %v771_v14 = vadd.f32 1.0, %v2022_v17  ;;  %2041 = vpow2.f32 %v736_v61  ;;  %v674_v15 = vmul.f32 1.442695, %v582_v21  ;;  %v3134_v0 = vadd.f32 %v455_v7, %v325_v28  ;;  %v230_v44 = vld [vmem:[%s3500_s2 + $0x1f8] sm:$0xff] }
  0xb0   :  { %v2026_v34 = vpop.eup %2025  ;;  %1765 = vmatprep.mubr.msk.f32.mxu0 %vm946_vm1, %v896_v30  ;;  %v928_v42 = vmul.f32 %v2024_v25, %v2916_v52  ;;  %v738_v22 = vmul.f32 1.442695, %v614_v11  ;;  %v357_v54 = vadd.f32 %v293_v29, %v163_v20  ;;  %v487_v33 = vmul.f32 %v2187_v19, %v422_v10  ;;  %v424_v17 = vld [vmem:[%s3501_s3 + $0x1f8] sm:$0xff] }
  0xb1   :  { %v2028_v31 = vpop.eup %2027  ;;  %2043 = vrcp.f32 %v771_v14  ;;  %v803_v32 = vadd.f32 1.0, %v2026_v34  ;;  %v583_v56 = vsub.f32 0.0, %v3134_v0  ;;  %v132_v39 = vmul.f32 %v2164_v8, %v67_v26 }
  0xb2   :  { %v2030_v52 = vpop.eup %2029  ;;  %1813 = vmatprep.mubr.msk.f32.mxu1 %vm946_vm1, %v928_v42  ;;  %v897_v60 = vmul.f32 %v2028_v31, %v2927_v58  ;;  %2045 = vpow2.f32 %v674_v15  ;;  %v3152_v4 = vadd.f32 %v487_v33, %v357_v54  ;;  %v262_v46 = vmul.f32 %v2176_v13, %v197_v16 }
  0xb3   :  { %2047 = vrcp.f32 %v803_v32  ;;  %v772_v43 = vadd.f32 1.0, %v2030_v52  ;;  %v676_v58 = vmul.f32 1.442695, %v583_v56  ;;  %v456_v27 = vmul.f32 %v2187_v19, %v391_v47 }
  0xb4   :  { %1766 = vmatmul.mubr.msk.f32.gmra.mxu0 %vm946_vm1, %v897_v60  ;;  %2049 = vpow2.f32 %v738_v22  ;;  %v615_v59 = vsub.f32 0.0, %v3152_v4  ;;  %v326_v45 = vadd.f32 %v262_v46, %v132_v39  ;;  %v164_v48 = vmul.f32 %v2164_v8, %v99_v12 }
  0xb5   :  { %v2032_v62 = vpop.eup %2031  ;;  %2051 = vrcp.f32 %v772_v43  ;;  %v294_v18 = vmul.f32 %v2176_v13, %v229_v35  ;;  %v488_v2 = vmul.f32 %v2187_v19, %v423_v36  ;;  %v133_v50 = vmul.f32 %v2164_v8, %v68_v57 }
  0xb6   :  { %v2034_v5 = vpop.eup %2033  ;;  %v929_v61 = vmul.f32 %v2032_v62, %v2956_v24  ;;  %2053 = vpow2.f32 %v676_v58  ;;  %v740_v40 = vmul.f32 1.442695, %v615_v59  ;;  %v3184_v21 = vadd.f32 %v456_v27, %v326_v45 }
  0xb7   :  { %v804_v28 = vadd.f32 1.0, %v2034_v5  ;;  %v358_v7 = vadd.f32 %v294_v18, %v164_v48  ;;  %v263_v20 = vmul.f32 %v2176_v13, %v198_v63  ;;  %v457_v10 = vmul.f32 %v2187_v19, %v392_v49 }
  0xb8   :  { %v2036_v30 = vpop.eup %2035  ;;  %1814 = vmatmul.mubr.msk.f32.gmra.mxu1 %vm946_vm1, %v929_v61  ;;  %2055 = vpow2.f32 %v740_v40  ;;  %v584_v24 = vsub.f32 0.0, %v3184_v21  ;;  %v165_v11 = vmul.f32 %v2164_v8, %v100_v53  ;;  %v295_v29 = vmul.f32 %v2176_v13, %v230_v44 }
  0xb9   :  { %v2038_v26 = vpop.eup %2037  ;;  %v898_v25 = vmul.f32 %v2036_v30, %v2976_v38  ;;  %2057 = vrcp.f32 %v804_v28  ;;  %v3196_v14 = vadd.f32 %v488_v2, %v358_v7  ;;  %v327_v15 = vadd.f32 %v263_v20, %v133_v50 }
  0xba   :  { %v773_v16 = vadd.f32 1.0, %v2038_v26  ;;  %v678_v34 = vmul.f32 1.442695, %v584_v24  ;;  %v359_v42 = vadd.f32 %v295_v29, %v165_v11  ;;  %v489_v22 = vmul.f32 %v2187_v19, %v424_v17 }
  0xbb   :  { %v2040_v54 = vpop.eup %2039  ;;  %1768 = vmatprep.mubr.msk.f32.mxu0 %vm946_vm1, %v898_v25  ;;  %v616_v33 = vsub.f32 0.0, %v3196_v14  ;;  %v3201_v8 = vadd.f32 %v457_v10, %v327_v15 }
  0xbc   :  { %v2042_v13 = vpop.eup %2041  ;;  %v930_v47 = vmul.f32 %v2040_v54, %v2989_v1  ;;  %2059 = vrcp.f32 %v773_v16  ;;  %v3204_v38 = vadd.f32 %v489_v22, %v359_v42 }
  0xbd   :  { %v805_v31 = vadd.f32 1.0, %v2042_v13  ;;  %2061 = vpow2.f32 %v678_v34  ;;  %v742_v32 = vmul.f32 1.442695, %v616_v33  ;;  %v585_v56 = vsub.f32 0.0, %v3201_v8 }
  0xbe   :  { %v2044_v39 = vpop.eup %2043  ;;  %1816 = vmatprep.mubr.msk.f32.mxu1 %vm946_vm1, %v930_v47  ;;  %v617_v19 = vsub.f32 0.0, %v3204_v38 }
  0xbf   :  { %v2046_v12 = vpop.eup %2045  ;;  %v899_v52 = vmul.f32 %v2044_v39, %v3005_v41  ;;  %2063 = vrcp.f32 %v805_v31  ;;  %v680_v60 = vmul.f32 1.442695, %v585_v56 }
  0xc0   :  { %v2048_v46 = vpop.eup %2047  ;;  %v774_v1 = vadd.f32 1.0, %v2046_v12  ;;  %2065 = vpow2.f32 %v742_v32  ;;  %v744_v35 = vmul.f32 1.442695, %v617_v19 }
  0xc1   :  { %v2050_v36 = vpop.eup %2049  ;;  %1769 = vmatmul.mubr.msk.f32.gmra.mxu0 %vm946_vm1, %v899_v52  ;;  %v931_v57 = vmul.f32 %v2048_v46, %v3015_v23  ;;  %2067 = vpow2.f32 %v680_v60 }
  0xc2   :  { %v2052_v43 = vpop.eup %2051  ;;  %2069 = vrcp.f32 %v774_v1  ;;  %v806_v58 = vadd.f32 1.0, %v2050_v36 }
  0xc3   :  { %v2054_v27 = vpop.eup %2053  ;;  %1817 = vmatmul.mubr.msk.f32.gmra.mxu1 %vm946_vm1, %v931_v57  ;;  %v900_v41 = vmul.f32 %v2052_v43, %v3036_v37  ;;  %2071 = vpow2.f32 %v744_v35 }
  0xc4   :  { %2073 = vrcp.f32 %v806_v58  ;;  %v775_v59 = vadd.f32 1.0, %v2054_v27 }
  0xc5   :  { %v2056_v45 = vpop.eup %2055  ;;  %1771 = vmatprep.mubr.msk.f32.mxu0 %vm946_vm1, %v900_v41 }
  0xc6   :  { %v2058_v48 = vpop.eup %2057  ;;  %2075 = vrcp.f32 %v775_v59  ;;  %v807_v63 = vadd.f32 1.0, %v2056_v45 }
  0xc7   :  { %v932_v23 = vmul.f32 %v2058_v48, %v3062_v9 }
  0xc8   :  { %2077 = vrcp.f32 %v807_v63 }
  0xc9   :  { %v2060_v49 = vpop.eup %2059  ;;  %1819 = vmatprep.mubr.msk.f32.mxu1 %vm946_vm1, %v932_v23 }
  0xca   :  { %v2062_v62 = vpop.eup %2061  ;;  %v901_v18 = vmul.f32 %v2060_v49, %v3082_v55 }
  0xcb   :  { %v776_v2 = vadd.f32 1.0, %v2062_v62 }
  0xcc   :  { %v2064_v37 = vpop.eup %2063  ;;  %1772 = vmatmul.mubr.msk.f32.gmra.mxu0 %vm946_vm1, %v901_v18 }
  0xcd   :  { %v2066_v50 = vpop.eup %2065  ;;  %v933_v53 = vmul.f32 %v2064_v37, %v3097_v51  ;;  %2079 = vrcp.f32 %v776_v2 }
  0xce   :  { %v2068_v44 = vpop.eup %2067  ;;  %v808_v5 = vadd.f32 1.0, %v2066_v50 }
  0xcf   :  { %v2070_v61 = vpop.eup %2069  ;;  %1820 = vmatmul.mubr.msk.f32.gmra.mxu1 %vm946_vm1, %v933_v53  ;;  %v777_v9 = vadd.f32 1.0, %v2068_v44 }
  0xd0   :  { %v2072_v40 = vpop.eup %2071  ;;  %v902_v28 = vmul.f32 %v2070_v61, %v3113_v3  ;;  %2081 = vrcp.f32 %v808_v5 }
  0xd1   :  { %v2074_v7 = vpop.eup %2073  ;;  %2083 = vrcp.f32 %v777_v9  ;;  %v809_v55 = vadd.f32 1.0, %v2072_v40 }
  0xd2   :  { %1774 = vmatprep.mubr.msk.f32.mxu0 %vm946_vm1, %v902_v28  ;;  %v934_v20 = vmul.f32 %v2074_v7, %v3119_v6 }
  0xd3   :  { %v2076_v10 = vpop.eup %2075  ;;  %2085 = vrcp.f32 %v809_v55 }
  0xd4   :  { %1822 = vmatprep.mubr.msk.f32.mxu1 %vm946_vm1, %v934_v20  ;;  %v903_v51 = vmul.f32 %v2076_v10, %v3134_v0 }
  0xd5   :  { %v2078_v17 = vpop.eup %2077 }
  0xd6   :  { %1775 = vmatmul.mubr.msk.f32.gmra.mxu0 %vm946_vm1, %v903_v51  ;;  %v935_v30 = vmul.f32 %v2078_v17, %v3152_v4  ;;  %v3240_v4 = vld [vmem:[%s3503_s5] ss:$0 sm:$0xff] }
  0xd8   :  { %1823 = vmatmul.mubr.msk.f32.gmra.mxu1 %vm946_vm1, %v935_v30 }
  0xda   :  { %v2080_v3 = vpop.eup %2079 }
  0xdb   :  { %v904_v24 = vmul.f32 %v2080_v3, %v3184_v21 }
  0xdd   :  { %v2082_v11 = vpop.eup %2081  ;;  %1777 = vmatprep.mubr.msk.f32.mxu0 %vm946_vm1, %v904_v24 }
  0xde   :  { %v2084_v6 = vpop.eup %2083  ;;  %v936_v29 = vmul.f32 %v2082_v11, %v3196_v14 }
  0xdf   :  { %v905_v26 = vmul.f32 %v2084_v6, %v3201_v8 }
  0xe0   :  { %v2086_v25 = vpop.eup %2085  ;;  %1825 = vmatprep.mubr.msk.f32.mxu1 %vm946_vm1, %v936_v29 }
  0xe1   :  { %1778 = vmatmul.mubr.msk.f32.gmra.mxu0 %vm946_vm1, %v905_v26  ;;  %v937_v0 = vmul.f32 %v2086_v25, %v3204_v38 }
  0xe3   :  { %1826 = vmatmul.mubr.msk.f32.gmra.mxu1 %vm946_vm1, %v937_v0 }
 0x103   :  { %v1734_v21 = vpop.f32.mrf.mxu0 }
 0x104   :  { %v1215_v15 = vadd.f32 %v1734_v21, %v3240_v4  ;;  %v1782_v14 = vpop.f32.mrf.mxu1 }
 0x105   :  { %v1375_v16 = vadd.f32 %v1782_v14, %v3240_v4  ;;  %v1209_v34 = vpop.f32.mrf.mxu0 }
 0x106   :  { %1529 = vst [vmem:[%s3504_s6 + $0x8] sm:$0xff] %v1215_v15  ;;  %v1210_v42 = vadd.f32 %v3240_v4, %v1209_v34  ;;  %v1369_v22 = vpop.f32.mrf.mxu1 }
 0x107   :  { %1561 = vst [vmem:[%s3504_s6 + $0x108] sm:$0xff] %v1375_v16  ;;  %v1370_v54 = vadd.f32 %v3240_v4, %v1369_v22 }
 0x108   :  { %1528 = vst [vmem:[%s3504_s6] sm:$0xff] %v1210_v42 }
 0x109   :  { %1560 = vst [vmem:[%s3504_s6 + $0x100] sm:$0xff] %v1370_v54  ;;  %v1737_v33 = vpop.f32.mrf.mxu0 }
 0x10a   :  { %v1225_v8 = vadd.f32 %v1737_v33, %v3240_v4 }
 0x10b   :  { %v1785_v13 = vpop.f32.mrf.mxu1  ;;  %v1219_v47 = vpop.f32.mrf.mxu0 }
 0x10c   :  { %1531 = vst [vmem:[%s3504_s6 + $0x18] sm:$0xff] %v1225_v8  ;;  %v1385_v38 = vadd.f32 %v1785_v13, %v3240_v4  ;;  %v1220_v31 = vadd.f32 %v3240_v4, %v1219_v47 }
 0x10d   :  { %v1379_v32 = vpop.f32.mrf.mxu1 }
 0x10e   :  { %1563 = vst [vmem:[%s3504_s6 + $0x118] sm:$0xff] %v1385_v38  ;;  %1530 = vst [vmem:[%s3504_s6 + $0x10] sm:$0xff] %v1220_v31  ;;  %v1380_v56 = vadd.f32 %v3240_v4, %v1379_v32 }
 0x110   :  { %1562 = vst [vmem:[%s3504_s6 + $0x110] sm:$0xff] %v1380_v56 }
 0x117   :  { %v1740_v39 = vpop.f32.mrf.mxu0 }
 0x118   :  { %v1235_v19 = vadd.f32 %v1740_v39, %v3240_v4  ;;  %v1788_v12 = vpop.f32.mrf.mxu1 }
 0x119   :  { %v1395_v52 = vadd.f32 %v1788_v12, %v3240_v4  ;;  %v1229_v60 = vpop.f32.mrf.mxu0 }
 0x11a   :  { %1533 = vst [vmem:[%s3504_s6 + $0x28] sm:$0xff] %v1235_v19  ;;  %v1230_v46 = vadd.f32 %v3240_v4, %v1229_v60  ;;  %v1389_v1 = vpop.f32.mrf.mxu1 }
 0x11b   :  { %1565 = vst [vmem:[%s3504_s6 + $0x128] sm:$0xff] %v1395_v52  ;;  %v1390_v35 = vadd.f32 %v3240_v4, %v1389_v1 }
 0x11c   :  { %1532 = vst [vmem:[%s3504_s6 + $0x20] sm:$0xff] %v1230_v46 }
 0x11d   :  { %1564 = vst [vmem:[%s3504_s6 + $0x120] sm:$0xff] %v1390_v35  ;;  %v1743_v36 = vpop.f32.mrf.mxu0 }
 0x11e   :  { %v1245_v57 = vadd.f32 %v1743_v36, %v3240_v4 }
 0x11f   :  { %v1791_v43 = vpop.f32.mrf.mxu1  ;;  %v1239_v58 = vpop.f32.mrf.mxu0 }
 0x120   :  { %1535 = vst [vmem:[%s3504_s6 + $0x38] sm:$0xff] %v1245_v57  ;;  %v1405_v27 = vadd.f32 %v1791_v43, %v3240_v4  ;;  %v1240_v41 = vadd.f32 %v3240_v4, %v1239_v58 }
 0x121   :  { %v1399_v59 = vpop.f32.mrf.mxu1 }
 0x122   :  { %1567 = vst [vmem:[%s3504_s6 + $0x138] sm:$0xff] %v1405_v27  ;;  %1534 = vst [vmem:[%s3504_s6 + $0x30] sm:$0xff] %v1240_v41  ;;  %v1400_v45 = vadd.f32 %v3240_v4, %v1399_v59 }
 0x124   :  { %1566 = vst [vmem:[%s3504_s6 + $0x130] sm:$0xff] %v1400_v45 }
 0x125   :  { %v1746_v48 = vpop.f32.mrf.mxu0 }
 0x126   :  { %v1255_v63 = vadd.f32 %v1746_v48, %v3240_v4 }
 0x127   :  { %v1249_v23 = vpop.f32.mrf.mxu0 }
 0x128   :  { %1537 = vst [vmem:[%s3504_s6 + $0x48] sm:$0xff] %v1255_v63  ;;  %v1250_v49 = vadd.f32 %v3240_v4, %v1249_v23 }
 0x12a   :  { %1536 = vst [vmem:[%s3504_s6 + $0x40] sm:$0xff] %v1250_v49 }
 0x12b   :  { %v1794_v62 = vpop.f32.mrf.mxu1 }
 0x12c   :  { %v1415_v18 = vadd.f32 %v1794_v62, %v3240_v4 }
 0x12d   :  { %v1409_v2 = vpop.f32.mrf.mxu1 }
 0x12e   :  { %1569 = vst [vmem:[%s3504_s6 + $0x148] sm:$0xff] %v1415_v18  ;;  %v1410_v37 = vadd.f32 %v3240_v4, %v1409_v2 }
 0x130   :  { %1568 = vst [vmem:[%s3504_s6 + $0x140] sm:$0xff] %v1410_v37 }
 0x132   :  { %v1749_v50 = vpop.f32.mrf.mxu0 }
 0x133   :  { %v1265_v53 = vadd.f32 %v1749_v50, %v3240_v4 }
 0x134   :  { %v1259_v44 = vpop.f32.mrf.mxu0 }
 0x135   :  { %1539 = vst [vmem:[%s3504_s6 + $0x58] sm:$0xff] %v1265_v53  ;;  %v1260_v5 = vadd.f32 %v3240_v4, %v1259_v44 }
 0x136   :  { %v1797_v61 = vpop.f32.mrf.mxu1 }
 0x137   :  { %v1425_v9 = vadd.f32 %v1797_v61, %v3240_v4  ;;  %1538 = vst [vmem:[%s3504_s6 + $0x50] sm:$0xff] %v1260_v5 }
 0x138   :  { %v1419_v40 = vpop.f32.mrf.mxu1 }
 0x139   :  { %1571 = vst [vmem:[%s3504_s6 + $0x158] sm:$0xff] %v1425_v9  ;;  %v1420_v28 = vadd.f32 %v3240_v4, %v1419_v40 }
 0x13b   :  { %1570 = vst [vmem:[%s3504_s6 + $0x150] sm:$0xff] %v1420_v28 }
 0x13f   :  { %v1752_v7 = vpop.f32.mrf.mxu0 }
 0x140   :  { %v1275_v55 = vadd.f32 %v1752_v7, %v3240_v4 }
 0x141   :  { %v1800_v20 = vpop.f32.mrf.mxu1  ;;  %v1269_v10 = vpop.f32.mrf.mxu0 }
 0x142   :  { %1541 = vst [vmem:[%s3504_s6 + $0x68] sm:$0xff] %v1275_v55  ;;  %v1435_v51 = vadd.f32 %v1800_v20, %v3240_v4  ;;  %v1270_v17 = vadd.f32 %v3240_v4, %v1269_v10 }
 0x143   :  { %v1429_v30 = vpop.f32.mrf.mxu1 }
 0x144   :  { %1573 = vst [vmem:[%s3504_s6 + $0x168] sm:$0xff] %v1435_v51  ;;  %1540 = vst [vmem:[%s3504_s6 + $0x60] sm:$0xff] %v1270_v17  ;;  %v1430_v3 = vadd.f32 %v3240_v4, %v1429_v30 }
 0x146   :  { %1572 = vst [vmem:[%s3504_s6 + $0x160] sm:$0xff] %v1430_v3 }
 0x14a   :  { %v1755_v24 = vpop.f32.mrf.mxu0 }
 0x14b   :  { %v1285_v11 = vadd.f32 %v1755_v24, %v3240_v4 }
 0x14c   :  { %v1279_v6 = vpop.f32.mrf.mxu0 }
 0x14d   :  { %1543 = vst [vmem:[%s3504_s6 + $0x78] sm:$0xff] %v1285_v11  ;;  %v1803_v29 = vpop.f32.mrf.mxu1  ;;  %v1280_v26 = vadd.f32 %v3240_v4, %v1279_v6 }
 0x14e   :  { %v1445_v25 = vadd.f32 %v1803_v29, %v3240_v4 }
 0x14f   :  { %1542 = vst [vmem:[%s3504_s6 + $0x70] sm:$0xff] %v1280_v26  ;;  %v1439_v0 = vpop.f32.mrf.mxu1 }
 0x150   :  { %1575 = vst [vmem:[%s3504_s6 + $0x178] sm:$0xff] %v1445_v25  ;;  %v1440_v21 = vadd.f32 %v3240_v4, %v1439_v0 }
 0x152   :  { %1574 = vst [vmem:[%s3504_s6 + $0x170] sm:$0xff] %v1440_v21 }
 0x154   :  { %v1758_v15 = vpop.f32.mrf.mxu0 }
 0x155   :  { %v1295_v14 = vadd.f32 %v1758_v15, %v3240_v4 }
 0x156   :  { %v1806_v16 = vpop.f32.mrf.mxu1  ;;  %v1289_v34 = vpop.f32.mrf.mxu0 }
 0x157   :  { %1545 = vst [vmem:[%s3504_s6 + $0x88] sm:$0xff] %v1295_v14  ;;  %v1455_v42 = vadd.f32 %v1806_v16, %v3240_v4  ;;  %v1290_v22 = vadd.f32 %v3240_v4, %v1289_v34 }
 0x158   :  { %v1449_v54 = vpop.f32.mrf.mxu1 }
 0x159   :  { %1577 = vst [vmem:[%s3504_s6 + $0x188] sm:$0xff] %v1455_v42  ;;  %1544 = vst [vmem:[%s3504_s6 + $0x80] sm:$0xff] %v1290_v22  ;;  %v1450_v33 = vadd.f32 %v3240_v4, %v1449_v54 }
 0x15b   :  { %1576 = vst [vmem:[%s3504_s6 + $0x180] sm:$0xff] %v1450_v33 }
 0x15f   :  { %v1761_v8 = vpop.f32.mrf.mxu0 }
 0x160   :  { %v1305_v13 = vadd.f32 %v1761_v8, %v3240_v4 }
 0x161   :  { %v1809_v47 = vpop.f32.mrf.mxu1  ;;  %v1299_v38 = vpop.f32.mrf.mxu0 }
 0x162   :  { %1547 = vst [vmem:[%s3504_s6 + $0x98] sm:$0xff] %v1305_v13  ;;  %v1465_v31 = vadd.f32 %v1809_v47, %v3240_v4  ;;  %v1300_v32 = vadd.f32 %v3240_v4, %v1299_v38 }
 0x163   :  { %v1459_v56 = vpop.f32.mrf.mxu1 }
 0x164   :  { %1579 = vst [vmem:[%s3504_s6 + $0x198] sm:$0xff] %v1465_v31  ;;  %1546 = vst [vmem:[%s3504_s6 + $0x90] sm:$0xff] %v1300_v32  ;;  %v1460_v39 = vadd.f32 %v3240_v4, %v1459_v56 }
 0x166   :  { %1578 = vst [vmem:[%s3504_s6 + $0x190] sm:$0xff] %v1460_v39 }
 0x16a   :  { %v1764_v19 = vpop.f32.mrf.mxu0 }
 0x16b   :  { %v1315_v12 = vadd.f32 %v1764_v19, %v3240_v4 }
 0x16c   :  { %v1309_v52 = vpop.f32.mrf.mxu0 }
 0x16d   :  { %1549 = vst [vmem:[%s3504_s6 + $0xa8] sm:$0xff] %v1315_v12  ;;  %v1812_v60 = vpop.f32.mrf.mxu1  ;;  %v1310_v46 = vadd.f32 %v3240_v4, %v1309_v52 }
 0x16e   :  { %v1475_v1 = vadd.f32 %v1812_v60, %v3240_v4 }
 0x16f   :  { %1548 = vst [vmem:[%s3504_s6 + $0xa0] sm:$0xff] %v1310_v46  ;;  %v1469_v35 = vpop.f32.mrf.mxu1 }
 0x170   :  { %1581 = vst [vmem:[%s3504_s6 + $0x1a8] sm:$0xff] %v1475_v1  ;;  %v1470_v36 = vadd.f32 %v3240_v4, %v1469_v35 }
 0x172   :  { %1580 = vst [vmem:[%s3504_s6 + $0x1a0] sm:$0xff] %v1470_v36 }
 0x174   :  { %v1767_v57 = vpop.f32.mrf.mxu0 }
 0x175   :  { %v1325_v43 = vadd.f32 %v1767_v57, %v3240_v4 }
 0x176   :  { %v1319_v58 = vpop.f32.mrf.mxu0 }
 0x177   :  { %1551 = vst [vmem:[%s3504_s6 + $0xb8] sm:$0xff] %v1325_v43  ;;  %v1320_v27 = vadd.f32 %v3240_v4, %v1319_v58 }
 0x178   :  { %v1815_v41 = vpop.f32.mrf.mxu1 }
 0x179   :  { %v1485_v59 = vadd.f32 %v1815_v41, %v3240_v4  ;;  %1550 = vst [vmem:[%s3504_s6 + $0xb0] sm:$0xff] %v1320_v27 }
 0x17a   :  { %v1479_v45 = vpop.f32.mrf.mxu1 }
 0x17b   :  { %1583 = vst [vmem:[%s3504_s6 + $0x1b8] sm:$0xff] %v1485_v59  ;;  %v1480_v48 = vadd.f32 %v3240_v4, %v1479_v45 }
 0x17d   :  { %1582 = vst [vmem:[%s3504_s6 + $0x1b0] sm:$0xff] %v1480_v48 }
 0x181   :  { %v1770_v63 = vpop.f32.mrf.mxu0 }
 0x182   :  { %v1335_v23 = vadd.f32 %v1770_v63, %v3240_v4 }
 0x183   :  { %v1818_v49 = vpop.f32.mrf.mxu1  ;;  %v1329_v62 = vpop.f32.mrf.mxu0 }
 0x184   :  { %1553 = vst [vmem:[%s3504_s6 + $0xc8] sm:$0xff] %v1335_v23  ;;  %v1495_v18 = vadd.f32 %v1818_v49, %v3240_v4  ;;  %v1330_v2 = vadd.f32 %v3240_v4, %v1329_v62 }
 0x185   :  { %v1489_v37 = vpop.f32.mrf.mxu1 }
 0x186   :  { %1585 = vst [vmem:[%s3504_s6 + $0x1c8] sm:$0xff] %v1495_v18  ;;  %1552 = vst [vmem:[%s3504_s6 + $0xc0] sm:$0xff] %v1330_v2  ;;  %v1490_v50 = vadd.f32 %v3240_v4, %v1489_v37 }
 0x188   :  { %1584 = vst [vmem:[%s3504_s6 + $0x1c0] sm:$0xff] %v1490_v50 }
 0x18c   :  { %v1773_v53 = vpop.f32.mrf.mxu0 }
 0x18d   :  { %v1345_v44 = vadd.f32 %v1773_v53, %v3240_v4 }
 0x18e   :  { %v1339_v5 = vpop.f32.mrf.mxu0 }
 0x18f   :  { %1555 = vst [vmem:[%s3504_s6 + $0xd8] sm:$0xff] %v1345_v44  ;;  %v1821_v61 = vpop.f32.mrf.mxu1  ;;  %v1340_v9 = vadd.f32 %v3240_v4, %v1339_v5 }
 0x190   :  { %v1505_v40 = vadd.f32 %v1821_v61, %v3240_v4 }
 0x191   :  { %1554 = vst [vmem:[%s3504_s6 + $0xd0] sm:$0xff] %v1340_v9  ;;  %v1499_v28 = vpop.f32.mrf.mxu1 }
 0x192   :  { %1587 = vst [vmem:[%s3504_s6 + $0x1d8] sm:$0xff] %v1505_v40  ;;  %v1500_v7 = vadd.f32 %v3240_v4, %v1499_v28 }
 0x194   :  { %1586 = vst [vmem:[%s3504_s6 + $0x1d0] sm:$0xff] %v1500_v7 }
 0x196   :  { %v1776_v55 = vpop.f32.mrf.mxu0 }
 0x197   :  { %v1355_v20 = vadd.f32 %v1776_v55, %v3240_v4 }
 0x198   :  { %v1824_v10 = vpop.f32.mrf.mxu1  ;;  %v1349_v51 = vpop.f32.mrf.mxu0 }
 0x199   :  { %1557 = vst [vmem:[%s3504_s6 + $0xe8] sm:$0xff] %v1355_v20  ;;  %v1515_v17 = vadd.f32 %v1824_v10, %v3240_v4  ;;  %v1350_v30 = vadd.f32 %v3240_v4, %v1349_v51 }
 0x19a   :  { %v1509_v3 = vpop.f32.mrf.mxu1 }
 0x19b   :  { %1589 = vst [vmem:[%s3504_s6 + $0x1e8] sm:$0xff] %v1515_v17  ;;  %1556 = vst [vmem:[%s3504_s6 + $0xe0] sm:$0xff] %v1350_v30  ;;  %v1510_v24 = vadd.f32 %v3240_v4, %v1509_v3 }
 0x19d   :  { %1588 = vst [vmem:[%s3504_s6 + $0x1e0] sm:$0xff] %v1510_v24 }
 0x1a1   :  { %v1779_v11 = vpop.f32.mrf.mxu0 }
 0x1a2   :  { %v1365_v6 = vadd.f32 %v1779_v11, %v3240_v4 }
 0x1a3   :  { %v1827_v29 = vpop.f32.mrf.mxu1  ;;  %v1359_v26 = vpop.f32.mrf.mxu0 }
 0x1a4   :  { %1559 = vst [vmem:[%s3504_s6 + $0xf8] sm:$0xff] %v1365_v6  ;;  %v1525_v25 = vadd.f32 %v1827_v29, %v3240_v4  ;;  %v1360_v0 = vadd.f32 %v3240_v4, %v1359_v26 }
 0x1a5   :  { %v1519_v21 = vpop.f32.mrf.mxu1 }
 0x1a6   :  { %1591 = vst [vmem:[%s3504_s6 + $0x1f8] sm:$0xff] %v1525_v25  ;;  %1558 = vst [vmem:[%s3504_s6 + $0xf0] sm:$0xff] %v1360_v0  ;;  %v1520_v15 = vadd.f32 %v3240_v4, %v1519_v21 }
 0x1a8   :  { %1590 = vst [vmem:[%s3504_s6 + $0x1f0] sm:$0xff] %v1520_v15 }
 0x1a9   :  { %1596 = vsyncpa [#allocation3], 1 }

</bundles_post_ra>
